<compile_context>
chip_gen: v5e
topology: v5e:2x2
jax: 0.10.0
libtpu: 0.0.40
codegen_flags: <defaults>
</compile_context>

<pallas_src>
import jax
import jax.numpy as jnp
from jax.experimental import pallas as pl
from jax.experimental.pallas import tpu as pltpu

DIM_X = 8
HIDDEN = (64, 512, 256)  # bayes1 -> 64, bayes2 -> 512, bayes3 -> 256, bayes4 -> dim_x


def _round_up(x, m):
    return ((x + m - 1) // m) * m


def _auto_row_tile(n):
    # 512 rows fills the 256x256 MXU (v6e/v7x) twice per pass and 128x128 (v5e)
    # four times, while keeping the f32/bf16 working set well under the scoped
    # VMEM limit on all three generations. Clamp for tiny problems (multiple of 16
    # so bf16 sublane tiling is satisfied).
    if n >= 512:
        return 512
    return max(16, _round_up(n, 16))


def _flipout_layer(h_f32, w_ref, b_ref, dw_ref, db_ref, s_in_ref, s_out_ref):
    """One LinearFlipout layer on a row tile. bf16 MXU operands, f32 accumulation."""
    h_bf = h_f32.astype(jnp.bfloat16)
    mean = jnp.dot(h_bf, w_ref[...], preferred_element_type=jnp.float32) + b_ref[...]
    pert = jnp.dot(h_bf * s_in_ref[...], dw_ref[...],
                   preferred_element_type=jnp.float32) + db_ref[...]
    return mean + pert * s_out_ref[...].astype(jnp.float32)


def process_model_kernel(x_ref,
                         w1, b1, dw1, db1, si1, so1,
                         w2, b2, dw2, db2, si2, so2,
                         w3, b3, dw3, db3, si3, so3,
                         w4, b4, dw4, db4, si4, so4,
                         o_ref):
    x = x_ref[...]                                        # f32, kept for the residual
    h = _flipout_layer(x, w1, b1, dw1, db1, si1, so1)
    h = jnp.maximum(h, 0.0)
    h = _flipout_layer(h, w2, b2, dw2, db2, si2, so2)
    h = jnp.maximum(h, 0.0)
    h = _flipout_layer(h, w3, b3, dw3, db3, si3, so3)
    h = jnp.maximum(h, 0.0)
    update = _flipout_layer(h, w4, b4, dw4, db4, si4, so4)
    o_ref[...] = x + update


def process_model_forward(last_state, params, noise, *, row_tile=None):
    """last_state: [bs, k, dim_x] -> [bs, k, dim_x]."""
    bs, k, dim_x = last_state.shape
    n = bs * k
    if row_tile is None:
        row_tile = _auto_row_tile(n)
    n_pad = _round_up(n, row_tile)
    pad = n_pad - n

    x = last_state.reshape(n, dim_x).astype(jnp.float32)
    if pad:
        x = jnp.pad(x, ((0, pad), (0, 0)))

    def row_spec(d):
        return pl.BlockSpec((row_tile, d), lambda i: (i, 0))

    def full_spec(shape):
        return pl.BlockSpec(shape, lambda i: (0,) * len(shape))

    ins = [x]
    in_specs = [row_spec(dim_x)]
    for p, nz in zip(params, noise):
        w = p["w"].astype(jnp.bfloat16)      # bf16 MXU operands
        dw = p["dw"].astype(jnp.bfloat16)
        b = p["b"].astype(jnp.float32)       # biases stay f32 (tiny, added post-acc)
        db = p["db"].astype(jnp.float32)
        s_in = nz["s_in"].astype(jnp.bfloat16)    # +/-1 exact in bf16, halves traffic
        s_out = nz["s_out"].astype(jnp.bfloat16)
        if pad:
            s_in = jnp.pad(s_in, ((0, pad), (0, 0)))
            s_out = jnp.pad(s_out, ((0, pad), (0, 0)))
        ins += [w, b, dw, db, s_in, s_out]
        in_specs += [
            full_spec(w.shape),
            full_spec(b.shape),
            full_spec(dw.shape),
            full_spec(db.shape),
            row_spec(s_in.shape[1]),
            row_spec(s_out.shape[1]),
        ]

    out = pl.pallas_call(
        process_model_kernel,
        out_shape=jax.ShapeDtypeStruct((n_pad, dim_x), jnp.float32),
        grid_spec=pltpu.PrefetchScalarGridSpec(
            num_scalar_prefetch=0,
            grid=(n_pad // row_tile,),
            in_specs=in_specs,
            out_specs=row_spec(dim_x),
        ),
        compiler_params=pltpu.CompilerParams(
            dimension_semantics=("parallel",),     # megacore-shard rows on v7x
            vmem_limit_bytes=32 * 1024 * 1024,     # headroom for 512-row tiles on v5e
        ),
    )(*ins)
    return out[:n].reshape(bs, k, dim_x)


def make_params_and_noise(key, n_rows, dim_x=DIM_X, hidden=HIDDEN):
    """Deterministic synthetic LinearFlipout parameters + flipout sign noise (f32)."""
    sizes = [dim_x, *hidden, dim_x]
    params, noise = [], []
    for li, (fin, fout) in enumerate(zip(sizes[:-1], sizes[1:])):
        ks = jax.random.split(jax.random.fold_in(key, li), 8)
        w_mu = 0.1 * jax.random.normal(ks[0], (fin, fout), jnp.float32)
        b_mu = 0.1 * jax.random.normal(ks[1], (1, fout), jnp.float32)
        rho_w = -3.0 + 0.1 * jax.random.normal(ks[2], (fin, fout), jnp.float32)
        rho_b = -3.0 + 0.1 * jax.random.normal(ks[3], (1, fout), jnp.float32)
        eps_w = jax.random.normal(ks[4], (fin, fout), jnp.float32)
        eps_b = jax.random.normal(ks[5], (1, fout), jnp.float32)
        # glue: softplus(rho)*eps precomputed outside the kernel (weight-space transform)
        dw = jax.nn.softplus(rho_w) * eps_w
        db = jax.nn.softplus(rho_b) * eps_b
        s_in = (jax.random.bernoulli(ks[6], 0.5, (n_rows, fin)).astype(jnp.float32) * 2.0 - 1.0)
        s_out = (jax.random.bernoulli(ks[7], 0.5, (n_rows, fout)).astype(jnp.float32) * 2.0 - 1.0)
        params.append({"w": w_mu, "b": b_mu, "dw": dw, "db": db})
        noise.append({"s_in": s_in, "s_out": s_out})
    return params, noise


def reference_forward(last_state, params, noise):
    """Pure-JAX f32 reference matching the PyTorch ProcessModel forward."""
    bs, k, dim_x = last_state.shape
    x0 = last_state.reshape(bs * k, dim_x)
    h = x0
    for li, (p, nz) in enumerate(zip(params, noise)):
        mean = h @ p["w"] + p["b"]
        pert = ((h * nz["s_in"]) @ p["dw"] + p["db"]) * nz["s_out"]
        h = mean + pert
        if li < 3:
            h = jnp.maximum(h, 0.0)
    return (x0 + h).reshape(bs, k, dim_x)


if __name__ == "__main__":
    batch, num_ensemble, dim_x = 2, 16, DIM_X
    key = jax.random.PRNGKey(0)
    k_state, k_param = jax.random.split(key)

    last_state = jax.random.normal(k_state, (batch, num_ensemble, dim_x), jnp.float32)
    params, noise = make_params_and_noise(k_param, batch * num_ensemble, dim_x)

    out = process_model_forward(last_state, params, noise)
    out = jax.block_until_ready(out)

    ref = reference_forward(last_state, params, noise)
    assert out.shape == (batch, num_ensemble, dim_x)
    # bf16 MXU operands / f32 accumulation vs. pure-f32 reference.
    assert jnp.allclose(out, ref, atol=2e-2, rtol=2e-2)

    print("KERNEL_OK")
</pallas_src>

<mosaic_0001>
module attributes {stable_mosaic.version = 11 : i64} {
  func.func @process_model_kernel(%arg0: i32, %arg1: memref<32x8xf32, #tpu.memory_space<vmem>>, %arg2: memref<8x64xbf16, #tpu.memory_space<vmem>>, %arg3: memref<1x64xf32, #tpu.memory_space<vmem>>, %arg4: memref<8x64xbf16, #tpu.memory_space<vmem>>, %arg5: memref<1x64xf32, #tpu.memory_space<vmem>>, %arg6: memref<32x8xbf16, #tpu.memory_space<vmem>>, %arg7: memref<32x64xbf16, #tpu.memory_space<vmem>>, %arg8: memref<64x512xbf16, #tpu.memory_space<vmem>>, %arg9: memref<1x512xf32, #tpu.memory_space<vmem>>, %arg10: memref<64x512xbf16, #tpu.memory_space<vmem>>, %arg11: memref<1x512xf32, #tpu.memory_space<vmem>>, %arg12: memref<32x64xbf16, #tpu.memory_space<vmem>>, %arg13: memref<32x512xbf16, #tpu.memory_space<vmem>>, %arg14: memref<512x256xbf16, #tpu.memory_space<vmem>>, %arg15: memref<1x256xf32, #tpu.memory_space<vmem>>, %arg16: memref<512x256xbf16, #tpu.memory_space<vmem>>, %arg17: memref<1x256xf32, #tpu.memory_space<vmem>>, %arg18: memref<32x512xbf16, #tpu.memory_space<vmem>>, %arg19: memref<32x256xbf16, #tpu.memory_space<vmem>>, %arg20: memref<256x8xbf16, #tpu.memory_space<vmem>>, %arg21: memref<1x8xf32, #tpu.memory_space<vmem>>, %arg22: memref<256x8xbf16, #tpu.memory_space<vmem>>, %arg23: memref<1x8xf32, #tpu.memory_space<vmem>>, %arg24: memref<32x256xbf16, #tpu.memory_space<vmem>>, %arg25: memref<32x8xbf16, #tpu.memory_space<vmem>>, %arg26: memref<32x8xf32, #tpu.memory_space<vmem>>) attributes {dimension_semantics = [#tpu.dimension_semantics<parallel>], iteration_bounds = array<i64: 1>, scalar_prefetch = 0 : i64, scratch_operands = 0 : i64, tpu.core_type = #tpu.core_type<tc>, window_params = [{transform_indices = @transform_0, window_bounds = array<i64: 32, 8>}, {pipeline_mode = #tpu.pipeline_mode<synchronous>, transform_indices = @transform_1, window_bounds = array<i64: 8, 64>}, {pipeline_mode = #tpu.pipeline_mode<synchronous>, transform_indices = @transform_2, window_bounds = array<i64: 1, 64>}, {pipeline_mode = #tpu.pipeline_mode<synchronous>, transform_indices = @transform_3, window_bounds = array<i64: 8, 64>}, {pipeline_mode = #tpu.pipeline_mode<synchronous>, transform_indices = @transform_4, window_bounds = array<i64: 1, 64>}, {transform_indices = @transform_5, window_bounds = array<i64: 32, 8>}, {transform_indices = @transform_6, window_bounds = array<i64: 32, 64>}, {pipeline_mode = #tpu.pipeline_mode<synchronous>, transform_indices = @transform_7, window_bounds = array<i64: 64, 512>}, {pipeline_mode = #tpu.pipeline_mode<synchronous>, transform_indices = @transform_8, window_bounds = array<i64: 1, 512>}, {pipeline_mode = #tpu.pipeline_mode<synchronous>, transform_indices = @transform_9, window_bounds = array<i64: 64, 512>}, {pipeline_mode = #tpu.pipeline_mode<synchronous>, transform_indices = @transform_10, window_bounds = array<i64: 1, 512>}, {transform_indices = @transform_11, window_bounds = array<i64: 32, 64>}, {transform_indices = @transform_12, window_bounds = array<i64: 32, 512>}, {pipeline_mode = #tpu.pipeline_mode<synchronous>, transform_indices = @transform_13, window_bounds = array<i64: 512, 256>}, {pipeline_mode = #tpu.pipeline_mode<synchronous>, transform_indices = @transform_14, window_bounds = array<i64: 1, 256>}, {pipeline_mode = #tpu.pipeline_mode<synchronous>, transform_indices = @transform_15, window_bounds = array<i64: 512, 256>}, {pipeline_mode = #tpu.pipeline_mode<synchronous>, transform_indices = @transform_16, window_bounds = array<i64: 1, 256>}, {transform_indices = @transform_17, window_bounds = array<i64: 32, 512>}, {transform_indices = @transform_18, window_bounds = array<i64: 32, 256>}, {pipeline_mode = #tpu.pipeline_mode<synchronous>, transform_indices = @transform_19, window_bounds = array<i64: 256, 8>}, {pipeline_mode = #tpu.pipeline_mode<synchronous>, transform_indices = @transform_20, window_bounds = array<i64: 1, 8>}, {pipeline_mode = #tpu.pipeline_mode<synchronous>, transform_indices = @transform_21, window_bounds = array<i64: 256, 8>}, {pipeline_mode = #tpu.pipeline_mode<synchronous>, transform_indices = @transform_22, window_bounds = array<i64: 1, 8>}, {transform_indices = @transform_23, window_bounds = array<i64: 32, 256>}, {transform_indices = @transform_24, window_bounds = array<i64: 32, 8>}, {transform_indices = @transform_25, window_bounds = array<i64: 32, 8>}]} {
    %c0 = arith.constant 0 : index
    %c0_0 = arith.constant 0 : index
    %0 = vector.load %arg1[%c0, %c0_0] : memref<32x8xf32, #tpu.memory_space<vmem>>, vector<32x8xf32>
    %1 = arith.truncf %0 : vector<32x8xf32> to vector<32x8xbf16>
    %c0_1 = arith.constant 0 : index
    %c0_2 = arith.constant 0 : index
    %2 = vector.load %arg2[%c0_1, %c0_2] : memref<8x64xbf16, #tpu.memory_space<vmem>>, vector<8x64xbf16>
    %cst = arith.constant dense<0.000000e+00> : vector<32x64xf32>
    %3 = tpu.matmul %1, %2, %cst {dimension_numbers = #tpu.dot_dimension_numbers<[1], [0], [0], [1], [0, 0, 1, 1], [], []>} : vector<32x8xbf16>, vector<8x64xbf16>, vector<32x64xf32> -> vector<32x64xf32>
    %c0_3 = arith.constant 0 : index
    %c0_4 = arith.constant 0 : index
    %4 = vector.load %arg3[%c0_3, %c0_4] : memref<1x64xf32, #tpu.memory_space<vmem>>, vector<1x64xf32>
    %5 = vector.broadcast %4 : vector<1x64xf32> to vector<32x64xf32>
    %6 = arith.addf %3, %5 : vector<32x64xf32>
    %c0_5 = arith.constant 0 : index
    %c0_6 = arith.constant 0 : index
    %7 = vector.load %arg6[%c0_5, %c0_6] : memref<32x8xbf16, #tpu.memory_space<vmem>>, vector<32x8xbf16>
    %8 = arith.mulf %1, %7 : vector<32x8xbf16>
    %c0_7 = arith.constant 0 : index
    %c0_8 = arith.constant 0 : index
    %9 = vector.load %arg4[%c0_7, %c0_8] : memref<8x64xbf16, #tpu.memory_space<vmem>>, vector<8x64xbf16>
    %cst_9 = arith.constant dense<0.000000e+00> : vector<32x64xf32>
    %10 = tpu.matmul %8, %9, %cst_9 {dimension_numbers = #tpu.dot_dimension_numbers<[1], [0], [0], [1], [0, 0, 1, 1], [], []>} : vector<32x8xbf16>, vector<8x64xbf16>, vector<32x64xf32> -> vector<32x64xf32>
    %c0_10 = arith.constant 0 : index
    %c0_11 = arith.constant 0 : index
    %11 = vector.load %arg5[%c0_10, %c0_11] : memref<1x64xf32, #tpu.memory_space<vmem>>, vector<1x64xf32>
    %12 = vector.broadcast %11 : vector<1x64xf32> to vector<32x64xf32>
    %13 = arith.addf %10, %12 : vector<32x64xf32>
    %c0_12 = arith.constant 0 : index
    %c0_13 = arith.constant 0 : index
    %14 = vector.load %arg7[%c0_12, %c0_13] : memref<32x64xbf16, #tpu.memory_space<vmem>>, vector<32x64xbf16>
    %15 = arith.extf %14 : vector<32x64xbf16> to vector<32x64xf32>
    %16 = arith.mulf %13, %15 : vector<32x64xf32>
    %17 = arith.addf %6, %16 : vector<32x64xf32>
    %cst_14 = arith.constant 0.000000e+00 : f32
    %18 = vector.broadcast %cst_14 : f32 to vector<32x64xf32>
    %19 = arith.maximumf %17, %18 : vector<32x64xf32>
    %20 = arith.truncf %19 : vector<32x64xf32> to vector<32x64xbf16>
    %c0_15 = arith.constant 0 : index
    %c0_16 = arith.constant 0 : index
    %21 = vector.load %arg8[%c0_15, %c0_16] : memref<64x512xbf16, #tpu.memory_space<vmem>>, vector<64x512xbf16>
    %cst_17 = arith.constant dense<0.000000e+00> : vector<32x512xf32>
    %22 = tpu.matmul %20, %21, %cst_17 {dimension_numbers = #tpu.dot_dimension_numbers<[1], [0], [0], [1], [0, 0, 1, 1], [], []>} : vector<32x64xbf16>, vector<64x512xbf16>, vector<32x512xf32> -> vector<32x512xf32>
    %c0_18 = arith.constant 0 : index
    %c0_19 = arith.constant 0 : index
    %23 = vector.load %arg9[%c0_18, %c0_19] : memref<1x512xf32, #tpu.memory_space<vmem>>, vector<1x512xf32>
    %24 = vector.broadcast %23 : vector<1x512xf32> to vector<32x512xf32>
    %25 = arith.addf %22, %24 : vector<32x512xf32>
    %c0_20 = arith.constant 0 : index
    %c0_21 = arith.constant 0 : index
    %26 = vector.load %arg12[%c0_20, %c0_21] : memref<32x64xbf16, #tpu.memory_space<vmem>>, vector<32x64xbf16>
    %27 = arith.mulf %20, %26 : vector<32x64xbf16>
    %c0_22 = arith.constant 0 : index
    %c0_23 = arith.constant 0 : index
    %28 = vector.load %arg10[%c0_22, %c0_23] : memref<64x512xbf16, #tpu.memory_space<vmem>>, vector<64x512xbf16>
    %cst_24 = arith.constant dense<0.000000e+00> : vector<32x512xf32>
    %29 = tpu.matmul %27, %28, %cst_24 {dimension_numbers = #tpu.dot_dimension_numbers<[1], [0], [0], [1], [0, 0, 1, 1], [], []>} : vector<32x64xbf16>, vector<64x512xbf16>, vector<32x512xf32> -> vector<32x512xf32>
    %c0_25 = arith.constant 0 : index
    %c0_26 = arith.constant 0 : index
    %30 = vector.load %arg11[%c0_25, %c0_26] : memref<1x512xf32, #tpu.memory_space<vmem>>, vector<1x512xf32>
    %31 = vector.broadcast %30 : vector<1x512xf32> to vector<32x512xf32>
    %32 = arith.addf %29, %31 : vector<32x512xf32>
    %c0_27 = arith.constant 0 : index
    %c0_28 = arith.constant 0 : index
    %33 = vector.load %arg13[%c0_27, %c0_28] : memref<32x512xbf16, #tpu.memory_space<vmem>>, vector<32x512xbf16>
    %34 = arith.extf %33 : vector<32x512xbf16> to vector<32x512xf32>
    %35 = arith.mulf %32, %34 : vector<32x512xf32>
    %36 = arith.addf %25, %35 : vector<32x512xf32>
    %cst_29 = arith.constant 0.000000e+00 : f32
    %37 = vector.broadcast %cst_29 : f32 to vector<32x512xf32>
    %38 = arith.maximumf %36, %37 : vector<32x512xf32>
    %39 = arith.truncf %38 : vector<32x512xf32> to vector<32x512xbf16>
    %c0_30 = arith.constant 0 : index
    %c0_31 = arith.constant 0 : index
    %40 = vector.load %arg14[%c0_30, %c0_31] : memref<512x256xbf16, #tpu.memory_space<vmem>>, vector<512x256xbf16>
    %cst_32 = arith.constant dense<0.000000e+00> : vector<32x256xf32>
    %41 = tpu.matmul %39, %40, %cst_32 {dimension_numbers = #tpu.dot_dimension_numbers<[1], [0], [0], [1], [0, 0, 1, 1], [], []>} : vector<32x512xbf16>, vector<512x256xbf16>, vector<32x256xf32> -> vector<32x256xf32>
    %c0_33 = arith.constant 0 : index
    %c0_34 = arith.constant 0 : index
    %42 = vector.load %arg15[%c0_33, %c0_34] : memref<1x256xf32, #tpu.memory_space<vmem>>, vector<1x256xf32>
    %43 = vector.broadcast %42 : vector<1x256xf32> to vector<32x256xf32>
    %44 = arith.addf %41, %43 : vector<32x256xf32>
    %c0_35 = arith.constant 0 : index
    %c0_36 = arith.constant 0 : index
    %45 = vector.load %arg18[%c0_35, %c0_36] : memref<32x512xbf16, #tpu.memory_space<vmem>>, vector<32x512xbf16>
    %46 = arith.mulf %39, %45 : vector<32x512xbf16>
    %c0_37 = arith.constant 0 : index
    %c0_38 = arith.constant 0 : index
    %47 = vector.load %arg16[%c0_37, %c0_38] : memref<512x256xbf16, #tpu.memory_space<vmem>>, vector<512x256xbf16>
    %cst_39 = arith.constant dense<0.000000e+00> : vector<32x256xf32>
    %48 = tpu.matmul %46, %47, %cst_39 {dimension_numbers = #tpu.dot_dimension_numbers<[1], [0], [0], [1], [0, 0, 1, 1], [], []>} : vector<32x512xbf16>, vector<512x256xbf16>, vector<32x256xf32> -> vector<32x256xf32>
    %c0_40 = arith.constant 0 : index
    %c0_41 = arith.constant 0 : index
    %49 = vector.load %arg17[%c0_40, %c0_41] : memref<1x256xf32, #tpu.memory_space<vmem>>, vector<1x256xf32>
    %50 = vector.broadcast %49 : vector<1x256xf32> to vector<32x256xf32>
    %51 = arith.addf %48, %50 : vector<32x256xf32>
    %c0_42 = arith.constant 0 : index
    %c0_43 = arith.constant 0 : index
    %52 = vector.load %arg19[%c0_42, %c0_43] : memref<32x256xbf16, #tpu.memory_space<vmem>>, vector<32x256xbf16>
    %53 = arith.extf %52 : vector<32x256xbf16> to vector<32x256xf32>
    %54 = arith.mulf %51, %53 : vector<32x256xf32>
    %55 = arith.addf %44, %54 : vector<32x256xf32>
    %cst_44 = arith.constant 0.000000e+00 : f32
    %56 = vector.broadcast %cst_44 : f32 to vector<32x256xf32>
    %57 = arith.maximumf %55, %56 : vector<32x256xf32>
    %58 = arith.truncf %57 : vector<32x256xf32> to vector<32x256xbf16>
    %c0_45 = arith.constant 0 : index
    %c0_46 = arith.constant 0 : index
    %59 = vector.load %arg20[%c0_45, %c0_46] : memref<256x8xbf16, #tpu.memory_space<vmem>>, vector<256x8xbf16>
    %cst_47 = arith.constant dense<0.000000e+00> : vector<32x8xf32>
    %60 = tpu.matmul %58, %59, %cst_47 {dimension_numbers = #tpu.dot_dimension_numbers<[1], [0], [0], [1], [0, 0, 1, 1], [], []>} : vector<32x256xbf16>, vector<256x8xbf16>, vector<32x8xf32> -> vector<32x8xf32>
    %c0_48 = arith.constant 0 : index
    %c0_49 = arith.constant 0 : index
    %61 = vector.load %arg21[%c0_48, %c0_49] : memref<1x8xf32, #tpu.memory_space<vmem>>, vector<1x8xf32>
    %62 = vector.broadcast %61 : vector<1x8xf32> to vector<32x8xf32>
    %63 = arith.addf %60, %62 : vector<32x8xf32>
    %c0_50 = arith.constant 0 : index
    %c0_51 = arith.constant 0 : index
    %64 = vector.load %arg24[%c0_50, %c0_51] : memref<32x256xbf16, #tpu.memory_space<vmem>>, vector<32x256xbf16>
    %65 = arith.mulf %58, %64 : vector<32x256xbf16>
    %c0_52 = arith.constant 0 : index
    %c0_53 = arith.constant 0 : index
    %66 = vector.load %arg22[%c0_52, %c0_53] : memref<256x8xbf16, #tpu.memory_space<vmem>>, vector<256x8xbf16>
    %cst_54 = arith.constant dense<0.000000e+00> : vector<32x8xf32>
    %67 = tpu.matmul %65, %66, %cst_54 {dimension_numbers = #tpu.dot_dimension_numbers<[1], [0], [0], [1], [0, 0, 1, 1], [], []>} : vector<32x256xbf16>, vector<256x8xbf16>, vector<32x8xf32> -> vector<32x8xf32>
    %c0_55 = arith.constant 0 : index
    %c0_56 = arith.constant 0 : index
    %68 = vector.load %arg23[%c0_55, %c0_56] : memref<1x8xf32, #tpu.memory_space<vmem>>, vector<1x8xf32>
    %69 = vector.broadcast %68 : vector<1x8xf32> to vector<32x8xf32>
    %70 = arith.addf %67, %69 : vector<32x8xf32>
    %c0_57 = arith.constant 0 : index
    %c0_58 = arith.constant 0 : index
    %71 = vector.load %arg25[%c0_57, %c0_58] : memref<32x8xbf16, #tpu.memory_space<vmem>>, vector<32x8xbf16>
    %72 = arith.extf %71 : vector<32x8xbf16> to vector<32x8xf32>
    %73 = arith.mulf %70, %72 : vector<32x8xf32>
    %74 = arith.addf %63, %73 : vector<32x8xf32>
    %75 = arith.addf %0, %74 : vector<32x8xf32>
    %c0_59 = arith.constant 0 : index
    %c0_60 = arith.constant 0 : index
    %76 = vector.load %arg26[%c0_59, %c0_60] : memref<32x8xf32, #tpu.memory_space<vmem>>, vector<32x8xf32>
    tpu.vector_store %arg26[%c0_59, %c0_60], %75 {strides = array<i32>} : memref<32x8xf32, #tpu.memory_space<vmem>>, vector<32x8xf32>,
    return
  }
  func.func @transform_0(%arg0: i32) -> (i32, i32) {
    %c0_i32 = arith.constant 0 : i32
    %c0_i32_0 = arith.constant 0 : i32
    return %arg0, %c0_i32 : i32, i32
  }
  func.func @transform_1(%arg0: i32) -> (i32, i32) {
    %c0_i32 = arith.constant 0 : i32
    %c0_i32_0 = arith.constant 0 : i32
    %c0_i32_1 = arith.constant 0 : i32
    return %c0_i32, %c0_i32_0 : i32, i32
  }
  func.func @transform_2(%arg0: i32) -> (i32, i32) {
    %c0_i32 = arith.constant 0 : i32
    %c0_i32_0 = arith.constant 0 : i32
    %c0_i32_1 = arith.constant 0 : i32
    return %c0_i32, %c0_i32_0 : i32, i32
  }
  func.func @transform_3(%arg0: i32) -> (i32, i32) {
    %c0_i32 = arith.constant 0 : i32
    %c0_i32_0 = arith.constant 0 : i32
    %c0_i32_1 = arith.constant 0 : i32
    return %c0_i32, %c0_i32_0 : i32, i32
  }
  func.func @transform_4(%arg0: i32) -> (i32, i32) {
    %c0_i32 = arith.constant 0 : i32
    %c0_i32_0 = arith.constant 0 : i32
    %c0_i32_1 = arith.constant 0 : i32
    return %c0_i32, %c0_i32_0 : i32, i32
  }
  func.func @transform_5(%arg0: i32) -> (i32, i32) {
    %c0_i32 = arith.constant 0 : i32
    %c0_i32_0 = arith.constant 0 : i32
    return %arg0, %c0_i32 : i32, i32
  }
  func.func @transform_6(%arg0: i32) -> (i32, i32) {
    %c0_i32 = arith.constant 0 : i32
    %c0_i32_0 = arith.constant 0 : i32
    return %arg0, %c0_i32 : i32, i32
  }
  func.func @transform_7(%arg0: i32) -> (i32, i32) {
    %c0_i32 = arith.constant 0 : i32
    %c0_i32_0 = arith.constant 0 : i32
    %c0_i32_1 = arith.constant 0 : i32
    return %c0_i32, %c0_i32_0 : i32, i32
  }
  func.func @transform_8(%arg0: i32) -> (i32, i32) {
    %c0_i32 = arith.constant 0 : i32
    %c0_i32_0 = arith.constant 0 : i32
    %c0_i32_1 = arith.constant 0 : i32
    return %c0_i32, %c0_i32_0 : i32, i32
  }
  func.func @transform_9(%arg0: i32) -> (i32, i32) {
    %c0_i32 = arith.constant 0 : i32
    %c0_i32_0 = arith.constant 0 : i32
    %c0_i32_1 = arith.constant 0 : i32
    return %c0_i32, %c0_i32_0 : i32, i32
  }
  func.func @transform_10(%arg0: i32) -> (i32, i32) {
    %c0_i32 = arith.constant 0 : i32
    %c0_i32_0 = arith.constant 0 : i32
    %c0_i32_1 = arith.constant 0 : i32
    return %c0_i32, %c0_i32_0 : i32, i32
  }
  func.func @transform_11(%arg0: i32) -> (i32, i32) {
    %c0_i32 = arith.constant 0 : i32
    %c0_i32_0 = arith.constant 0 : i32
    return %arg0, %c0_i32 : i32, i32
  }
  func.func @transform_12(%arg0: i32) -> (i32, i32) {
    %c0_i32 = arith.constant 0 : i32
    %c0_i32_0 = arith.constant 0 : i32
    return %arg0, %c0_i32 : i32, i32
  }
  func.func @transform_13(%arg0: i32) -> (i32, i32) {
    %c0_i32 = arith.constant 0 : i32
    %c0_i32_0 = arith.constant 0 : i32
    %c0_i32_1 = arith.constant 0 : i32
    return %c0_i32, %c0_i32_0 : i32, i32
  }
  func.func @transform_14(%arg0: i32) -> (i32, i32) {
    %c0_i32 = arith.constant 0 : i32
    %c0_i32_0 = arith.constant 0 : i32
    %c0_i32_1 = arith.constant 0 : i32
    return %c0_i32, %c0_i32_0 : i32, i32
  }
  func.func @transform_15(%arg0: i32) -> (i32, i32) {
    %c0_i32 = arith.constant 0 : i32
    %c0_i32_0 = arith.constant 0 : i32
    %c0_i32_1 = arith.constant 0 : i32
    return %c0_i32, %c0_i32_0 : i32, i32
  }
  func.func @transform_16(%arg0: i32) -> (i32, i32) {
    %c0_i32 = arith.constant 0 : i32
    %c0_i32_0 = arith.constant 0 : i32
    %c0_i32_1 = arith.constant 0 : i32
    return %c0_i32, %c0_i32_0 : i32, i32
  }
  func.func @transform_17(%arg0: i32) -> (i32, i32) {
    %c0_i32 = arith.constant 0 : i32
    %c0_i32_0 = arith.constant 0 : i32
    return %arg0, %c0_i32 : i32, i32
  }
  func.func @transform_18(%arg0: i32) -> (i32, i32) {
    %c0_i32 = arith.constant 0 : i32
    %c0_i32_0 = arith.constant 0 : i32
    return %arg0, %c0_i32 : i32, i32
  }
  func.func @transform_19(%arg0: i32) -> (i32, i32) {
    %c0_i32 = arith.constant 0 : i32
    %c0_i32_0 = arith.constant 0 : i32
    %c0_i32_1 = arith.constant 0 : i32
    return %c0_i32, %c0_i32_0 : i32, i32
  }
  func.func @transform_20(%arg0: i32) -> (i32, i32) {
    %c0_i32 = arith.constant 0 : i32
    %c0_i32_0 = arith.constant 0 : i32
    %c0_i32_1 = arith.constant 0 : i32
    return %c0_i32, %c0_i32_0 : i32, i32
  }
  func.func @transform_21(%arg0: i32) -> (i32, i32) {
    %c0_i32 = arith.constant 0 : i32
    %c0_i32_0 = arith.constant 0 : i32
    %c0_i32_1 = arith.constant 0 : i32
    return %c0_i32, %c0_i32_0 : i32, i32
  }
  func.func @transform_22(%arg0: i32) -> (i32, i32) {
    %c0_i32 = arith.constant 0 : i32
    %c0_i32_0 = arith.constant 0 : i32
    %c0_i32_1 = arith.constant 0 : i32
    return %c0_i32, %c0_i32_0 : i32, i32
  }
  func.func @transform_23(%arg0: i32) -> (i32, i32) {
    %c0_i32 = arith.constant 0 : i32
    %c0_i32_0 = arith.constant 0 : i32
    return %arg0, %c0_i32 : i32, i32
  }
  func.func @transform_24(%arg0: i32) -> (i32, i32) {
    %c0_i32 = arith.constant 0 : i32
    %c0_i32_0 = arith.constant 0 : i32
    return %arg0, %c0_i32 : i32, i32
  }
  func.func @transform_25(%arg0: i32) -> (i32, i32) {
    %c0_i32 = arith.constant 0 : i32
    %c0_i32_0 = arith.constant 0 : i32
    return %arg0, %c0_i32 : i32, i32
  }
}

</mosaic_0001>

<bundles_post_ra>
// kernel: tpu_custom_call.1
= control target key start
LH: loop header
LB: loop body
LE: loop exit
PB: predicated region body
PF: predicated region fallthrough
CT: control target
= control target key end

     0   :  { %s4749_s0 = inlined_call_operand.vmem [shape: f32[32,8], index: 0, kind: input, shape index: {}]   ;;  %s4750_s1 = inlined_call_operand.vmem [shape: bf16[8,64], index: 1, kind: input, shape index: {}]   ;;  %s4751_s2 = inlined_call_operand.hbm [shape: f32[1,64], index: 2, kind: input, shape index: {}]   ;;  %s4752_s3 = inlined_call_operand.hbm [shape: bf16[8,64], index: 3, kind: input, shape index: {}]   ;;  %s4753_s4 = inlined_call_operand.hbm [shape: f32[1,64], index: 4, kind: input, shape index: {}]   ;;  %s4754_s5 = inlined_call_operand.vmem [shape: bf16[32,8], index: 5, kind: input, shape index: {}]   ;;  %s4755_s6 = inlined_call_operand.vmem [shape: bf16[32,64], index: 6, kind: input, shape index: {}]   ;;  %s4756_s7 = inlined_call_operand.vmem [shape: bf16[64,512], index: 7, kind: input, shape index: {}]   ;;  %s4757_s8 = inlined_call_operand.hbm [shape: f32[1,512], index: 8, kind: input, shape index: {}]   ;;  %s4758_s9 = inlined_call_operand.vmem [shape: bf16[64,512], index: 9, kind: input, shape index: {}]   ;;  %s4759_s10 = inlined_call_operand.hbm [shape: f32[1,512], index: 10, kind: input, shape index: {}]   ;;  %s4760_s11 = inlined_call_operand.vmem [shape: bf16[32,64], index: 11, kind: input, shape index: {}]   ;;  %s4761_s12 = inlined_call_operand.hbm [shape: bf16[32,512], index: 12, kind: input, shape index: {}]   ;;  %s4762_s13 = inlined_call_operand.hbm [shape: bf16[512,256], index: 13, kind: input, shape index: {}]   ;;  %s4763_s14 = inlined_call_operand.vmem [shape: f32[1,256], index: 14, kind: input, shape index: {}]   ;;  %s4764_s15 = inlined_call_operand.hbm [shape: bf16[512,256], index: 15, kind: input, shape index: {}]   ;;  %s4765_s16 = inlined_call_operand.vmem [shape: f32[1,256], index: 16, kind: input, shape index: {}]   ;;  %s4766_s17 = inlined_call_operand.hbm [shape: bf16[32,512], index: 17, kind: input, shape index: {}]   ;;  %s4767_s18 = inlined_call_operand.vmem [shape: bf16[32,256], index: 18, kind: input, shape index: {}]   ;;  %s4768_s19 = inlined_call_operand.vmem [shape: bf16[256,8], index: 19, kind: input, shape index: {}]   ;;  %s4769_s20 = inlined_call_operand.vmem [shape: f32[1,8], index: 20, kind: input, shape index: {}]   ;;  %s4770_s21 = inlined_call_operand.vmem [shape: bf16[256,8], index: 21, kind: input, shape index: {}]   ;;  %s4771_s22 = inlined_call_operand.vmem [shape: f32[1,8], index: 22, kind: input, shape index: {}]   ;;  %s4772_s23 = inlined_call_operand.hbm [shape: bf16[32,256], index: 23, kind: input, shape index: {}]   ;;  %s4773_s24 = inlined_call_operand.vmem [shape: bf16[32,8], index: 24, kind: input, shape index: {}]   ;;  %s4774_s25 = inlined_call_operand.vmem [shape: f32[32,8], index: 25, kind: output, shape index: {}]  }
   0x1   :  { %4782 = sst [smem:[#allocation24_spill]] %s4749_s0 }
   0x2   :  { %4783 = sst [smem:[#allocation25_spill]] %s4750_s1 }
   0x3   :  { %4784 = sst [smem:[#allocation26_spill]] %s4751_s2 }
   0x4   :  { %4785 = sst [smem:[#allocation27_spill]] %s4752_s3 }
   0x5   :  { %4786 = sst [smem:[#allocation28_spill]] %s4753_s4 }
   0x6   :  { %4787 = sst [smem:[#allocation29_spill]] %s4754_s5 }
   0x7   :  { %4788 = sst [smem:[#allocation30_spill]] %s4755_s6 }
   0x8   :  { %4789 = sst [smem:[#allocation31_spill]] %s4756_s7 }
   0x9   :  { %4790 = sst [smem:[#allocation32_spill]] %s4757_s8 }
   0xa   :  { %4791 = sst [smem:[#allocation33_spill]] %s4758_s9 }
   0xb   :  { %30 = vsyncpa [#allocation3], 0 }
   0xc   :  { %31 = vsyncpa [#allocation5], 0 }
   0xd   :  { %32 = vsyncpa [#allocation8], 0 }
   0xe   :  { %33 = vsyncpa [#allocation11], 0 }
   0xf   :  { %34 = vsyncpa [#allocation14], 0  ;;  %s4792_s6 = sld [smem:[#allocation27_spill]] }
  0x15   :  { %s56_s30 = sshll.u32 %s4792_s6, 4  ;;  %s57_s30 = int_to_ptr.hbm [resolvable:$true] %s56_s30 }
  0x16   :  { %35 = vsyncpa [#allocation17], 0  ;;  %s3786_s7 = smov [#allocation4]   ;;  %s4793_s8 = sld [smem:[#allocation32_spill]] }
  0x17   :  { %s58_s3 = sshll.u32 %s3786_s7, 4  ;;  %s3787_s4 = smov [#allocation7]   ;;  %s59_s3 = int_to_ptr.vmem [resolvable:$true] %s58_s3 }
  0x18   :  { %61 = dma.hbm_to_vmem [thread:$0]  %s57_s30, 64, %s59_s3, [#allocation5]  }
  0x19   :  { %s86_s28 = sshll.u32 %s3787_s4, 4  ;;  %s109_s0 = sshll.u32 %s4761_s12, 4  ;;  %s87_s28 = int_to_ptr.vmem [resolvable:$true] %s86_s28  ;;  %s110_s0 = int_to_ptr.hbm [resolvable:$true] %s109_s0 }
  0x1a   :  { %s3788_s29 = smov [#allocation10]   ;;  %s4780_s6 = smov 256  }
  0x1b   :  { %s111_s2 = sshll.u32 %s3788_s29, 4  ;;  %s4781_s7 = smov 16   ;;  %s112_s2 = int_to_ptr.vmem [resolvable:$true] %s111_s2 }
  0x1c   :  { %s84_s27 = sshll.u32 %s4793_s8, 4  ;;  %s137_s26 = sshll.u32 %s4764_s15, 4  ;;  %s85_s27 = int_to_ptr.hbm [resolvable:$true] %s84_s27  ;;  %s138_s26 = int_to_ptr.hbm [resolvable:$true] %s137_s26 }
  0x1d   :  { %89 = dma.hbm_to_vmem [thread:$0]  %s85_s27, 64, %s87_s28, [#allocation8]  }
  0x1e   :  { %117 = dma.hbm_to_vmem [thread:$0]  %s110_s0, 1024, %s112_s2, [#allocation11], %s4780_s6, %s4780_s6, %s4781_s7  }
  0x1f   :  { %s3791_s1 = smov [#allocation13]   ;;  %s4794_s9 = sld [smem:[#allocation26_spill]] }
  0x20   :  { %s139_s8 = sshll.u32 %s3791_s1, 4  ;;  %s3792_s28 = smov 128   ;;  %s140_s8 = int_to_ptr.vmem [resolvable:$true] %s139_s8 }
  0x21   :  { %s3793_s5 = smov 8   ;;  %s4795_s2 = sld [smem:[#allocation28_spill]] }
  0x22   :  { %145 = dma.hbm_to_vmem [thread:$0]  %s138_s26, 8192, %s140_s8, [#allocation14], %s3792_s28, %s3792_s28, %s3793_s5  }
  0x23   :  { %s3794_s15 = smov [#allocation2]   ;;  %s3795_s1 = smov [#allocation6]  }
  0x24   :  { %s47_s3 = sshll.u32 %s3794_s15, 4  ;;  %s69_s12 = sshll.u32 %s3795_s1, 4  ;;  %s48_s3 = int_to_ptr.vmem [resolvable:$true] %s47_s3  ;;  %s70_s12 = int_to_ptr.vmem [resolvable:$true] %s69_s12 }
  0x25   :  { %s45_s27 = sshll.u32 %s4794_s9, 4  ;;  %s97_s6 = sshll.u32 %s4759_s10, 4  ;;  %s46_s27 = int_to_ptr.hbm [resolvable:$true] %s45_s27  ;;  %s98_s6 = int_to_ptr.hbm [resolvable:$true] %s97_s6 }
  0x26   :  { %50 = dma.hbm_to_vmem [thread:$0]  %s46_s27, 16, %s48_s3, [#allocation3]  }
  0x27   :  { %s67_s30 = sshll.u32 %s4795_s2, 4  ;;  %s122_s8 = sshll.u32 %s4762_s13, 4  ;;  %s68_s30 = int_to_ptr.hbm [resolvable:$true] %s67_s30  ;;  %s123_s8 = int_to_ptr.hbm [resolvable:$true] %s122_s8 }
  0x28   :  { %72 = dma.hbm_to_vmem [thread:$0]  %s68_s30, 16, %s70_s12, [#allocation5]  }
  0x29   :  { %s3796_s0 = smov [#allocation9]   ;;  %s3797_s2 = smov [#allocation12]  }
  0x2a   :  { %s99_s29 = sshll.u32 %s3796_s0, 4  ;;  %s124_s27 = sshll.u32 %s3797_s2, 4  ;;  %s100_s29 = int_to_ptr.vmem [resolvable:$true] %s99_s29  ;;  %s125_s27 = int_to_ptr.vmem [resolvable:$true] %s124_s27 }
  0x2b   :  { %102 = dma.hbm_to_vmem [thread:$0]  %s98_s6, 64, %s100_s29, [#allocation8]  }
  0x2c   :  { %s152_s1 = sshll.u32 %s4766_s17, 4  ;;  %s175_s13 = sshll.u32 %s4772_s23, 4  ;;  %s153_s1 = int_to_ptr.hbm [resolvable:$true] %s152_s1  ;;  %s176_s13 = int_to_ptr.hbm [resolvable:$true] %s175_s13 }
  0x2d   :  { %130 = dma.hbm_to_vmem [thread:$0]  %s123_s8, 8192, %s125_s27, [#allocation11], %s3792_s28, %s3792_s28, %s3793_s5  }
  0x2e   :  { %s3798_s30 = smov [#allocation15]   ;;  %s4796_s6 = smov 16  }
  0x2f   :  { %s154_s12 = sshll.u32 %s3798_s30, 4  ;;  %s4797_s4 = smov 256   ;;  %s155_s12 = int_to_ptr.vmem [resolvable:$true] %s154_s12 }
  0x30   :  { %160 = dma.hbm_to_vmem [thread:$0]  %s153_s1, 1024, %s155_s12, [#allocation14], %s4797_s4, %s4797_s4, %s4796_s6  }
  0x31   :  { %s3799_s9 = smov [#allocation16]  }
  0x32   :  { %s177_s17 = sshll.u32 %s3799_s9, 4  ;;  %s178_s17 = int_to_ptr.vmem [resolvable:$true] %s177_s17 }
  0x33   :  { %183 = dma.hbm_to_vmem [thread:$0]  %s176_s13, 512, %s178_s17, [#allocation17], %s3792_s28, %s3792_s28, %s3793_s5  }
  0x34   :  { %3774 = dma.done.wait [#allocation3], 16  }
  0x35   :  { %3775 = vsyncadd [#allocation3], 4294967280 }
  0x36   :  { %3776 = dma.done.wait [#allocation5], 80  }
  0x37   :  { %3777 = vsyncadd [#allocation5], 4294967216 }
  0x38   :  { %3778 = dma.done.wait [#allocation8], 128  }
  0x39   :  { %3779 = vsyncadd [#allocation8], 4294967168 }
  0x3a   :  { %3780 = dma.done.wait [#allocation11], 9216  }
  0x3b   :  { %3781 = vsyncadd [#allocation11], 4294958080 }
  0x3c   :  { %3782 = dma.done.wait [#allocation14], 9216  }
  0x3d   :  { %3783 = vsyncadd [#allocation14], 4294958080 }
  0x3e   :  { %3784 = dma.done.wait [#allocation17], 512  }
  0x3f   :  { %3785 = vsyncadd [#allocation17], 4294966784  ;;  %vm257_vm0 = vcmask 1043456   ;;  %s4798_s8 = sld [smem:[#allocation25_spill]]  ;;  %v298_v1 = vld [vmem:[#allocation4] sm:$0xf] }
  0x40   :  { %s4799_s5 = sld [smem:[#allocation24_spill]]  ;;  %v310_v4 = vsel %vm257_vm0, %v298_v1, 0  ;;  %vm250_vm1 = vcmask 64512   ;;  %vm471_vm2 = vcmask 523264  }
  0x41   :  { %s4800_s3 = sld [smem:[#allocation29_spill]]  ;;  %319 = vmatpush.bf16.msra.mxu1 %v310_v4  ;;  %3511 = vmatpush.bf16.msra.mxu3 %v310_v4 }
  0x42   :  { %s4801_s9 = sld [smem:[#allocation31_spill]] }
  0x43   :  { %s4802_s2 = sld [smem:[#allocation30_spill]] }
  0x45   :  { %v235_v0 = vld [vmem:[%s4798_s8] sm:$0xf] }
  0x46   :  { %v227_v2 = vld [vmem:[%s4799_s5] sm:$0xff]  ;;  %v259_v3 = vsel %vm257_vm0, %v235_v0, 0  ;;  %v228_v5 = vld [vmem:[%s4799_s5 + $0x8] sm:$0xff]  ;;  %v229_v8 = vld [vmem:[%s4799_s5 + $0x10] sm:$0xff] }
  0x47   :  { %v231_v6 = vpack.c.bf16 %v227_v2, %v227_v2  ;;  %v3475_v7 = vld [vmem:[%s4800_s3] sm:$0xff]   ;;  %268 = vmatpush.bf16.msra.mxu0 %v259_v3  ;;  %v232_v9 = vpack.c.bf16 %v228_v5, %v228_v5  ;;  %v230_v12 = vld [vmem:[%s4799_s5 + $0x18] sm:$0xff]  ;;  %v233_v13 = vpack.c.bf16 %v229_v8, %v229_v8  ;;  %v3506_v14 = vld [vmem:[%s4800_s3 + $0x8] sm:$0xff]   ;;  %3510 = vmatpush.bf16.msra.mxu2 %v259_v3  ;;  %s4803_s3 = sld [smem:[#allocation33_spill]] }
  0x48   :  { %v3476_v10 = vunpack.c.l.bf16 %v3475_v7  ;;  %v3477_v11 = vunpack.c.h.bf16 %v3475_v7  ;;  %v234_v17 = vpack.c.bf16 %v230_v12, %v230_v12  ;;  %v3480_v18 = vunpack.c.l.bf16 %v3506_v14  ;;  %v2548_v34 = vld [vmem:[%s4801_s9 + $0x60] sm:$0xf]  ;;  %v3296_v35 = vld [vmem:[%s4801_s9 + $0x6c] sm:$0xf0]  ;;  %v3294_v36 = vld [vmem:[%s4801_s9 + $0x64] sm:$0xf] }
  0x49   :  { %v244_v15 = vunpack.c.l.b16 %v231_v6  ;;  %v284_v16 = vunpack.c.l.bf16 %v231_v6  ;;  %v245_v19 = vunpack.c.l.b16 %v232_v9  ;;  %v285_v20 = vunpack.c.l.bf16 %v232_v9  ;;  %v2550_v38 = vld [vmem:[%s4801_s9 + $0x70] sm:$0xf0]  ;;  %v2556_v39 = vld [vmem:[%s4801_s9 + $0x68] sm:$0xf]  ;;  %v3297_v40 = vld [vmem:[%s4801_s9 + $0x74] sm:$0xf0] }
  0x4a   :  { %v3481_v21 = vunpack.c.h.bf16 %v3506_v14  ;;  %v286_v22 = vunpack.c.l.bf16 %v233_v13  ;;  %v287_v24 = vunpack.c.l.bf16 %v234_v17  ;;  %v246_v25 = vunpack.c.l.b16 %v233_v13  ;;  %v3295_v43 = vld [vmem:[%s4801_s9 + $0x6c] sm:$0xf]  ;;  %v2558_v44 = vld [vmem:[%s4801_s9 + $0x78] sm:$0xf0]  ;;  %v2532_v46 = vld [vmem:[%s4801_s9 + $0x40] sm:$0xf] }
  0x4b   :  { %v292_v23 = vmul.f32 %v3476_v10, %v284_v16  ;;  %v247_v26 = vunpack.c.l.b16 %v234_v17  ;;  %v248_v27 = vpack.c.b16 %v245_v19, %v244_v15  ;;  %v293_v28 = vmul.f32 %v3477_v11, %v285_v20  ;;  %v3292_v47 = vld [vmem:[%s4801_s9 + $0x4c] sm:$0xf0]  ;;  %v3290_v48 = vld [vmem:[%s4801_s9 + $0x44] sm:$0xf]  ;;  %v2534_v50 = vld [vmem:[%s4801_s9 + $0x50] sm:$0xf0] }
  0x4c   :  { %v294_v29 = vmul.f32 %v3480_v18, %v286_v22  ;;  %v295_v30 = vmul.f32 %v3481_v21, %v287_v24  ;;  %v2549_v37 = vor.u32 %v3296_v35, %v2548_v34  ;;  %v2553_v41 = vor.u32 %v3294_v36, %v2550_v38  ;;  %v2540_v51 = vld [vmem:[%s4801_s9 + $0x48] sm:$0xf]  ;;  %v3293_v53 = vld [vmem:[%s4801_s9 + $0x54] sm:$0xf0]  ;;  %v3291_v54 = vld [vmem:[%s4801_s9 + $0x4c] sm:$0xf] }
  0x4d   :  { %v249_v31 = vpack.c.b16 %v247_v26, %v246_v25  ;;  %2494 = vmatmul.msk.bf16.vlgmr.msra.gmra.mxu0 %vm250_vm1, %v248_v27  ;;  %v296_v32 = vpack.c.bf16 %v293_v28, %v292_v23  ;;  %v2557_v42 = vor.u32 %v3297_v40, %v2556_v39  ;;  %v2561_v45 = vor.u32 %v3295_v43, %v2558_v44  ;;  %v2542_v55 = vld [vmem:[%s4801_s9 + $0x58] sm:$0xf0]  ;;  %v2516_v58 = vld [vmem:[%s4801_s9 + $0x20] sm:$0xf]  ;;  %v3288_v59 = vld [vmem:[%s4801_s9 + $0x2c] sm:$0xf0] }
  0x4e   :  { %v297_v33 = vpack.c.bf16 %v295_v30, %v294_v29  ;;  %482 = vmatpush.bf16.msrb.mxu2 %v2549_v37  ;;  %501 = vmatpush.bf16.msrb.mxu3 %v2553_v41  ;;  %v2533_v49 = vor.u32 %v3292_v47, %v2532_v46  ;;  %v2537_v52 = vor.u32 %v3290_v48, %v2534_v50  ;;  %v3286_v60 = vld [vmem:[%s4801_s9 + $0x24] sm:$0xf]  ;;  %v2518_v62 = vld [vmem:[%s4801_s9 + $0x30] sm:$0xf0]  ;;  %v2524_v63 = vld [vmem:[%s4801_s9 + $0x28] sm:$0xf] }
  0x4f   :  { %2495 = vmatmul.msk.bf16.vlgmr.msra.gmra.mxu2 %vm250_vm1, %v249_v31  ;;  %2496 = vmatmul.msk.bf16.vlgmr.msra.gmra.mxu1 %vm250_vm1, %v296_v32  ;;  %v2541_v56 = vor.u32 %v3293_v53, %v2540_v51  ;;  %v2545_v57 = vor.u32 %v3291_v54, %v2542_v55  ;;  %v2517_v61 = vor.u32 %v3288_v59, %v2516_v58  ;;  %v3289_v0 = vld [vmem:[%s4801_s9 + $0x34] sm:$0xf0]  ;;  %v3287_v3 = vld [vmem:[%s4801_s9 + $0x2c] sm:$0xf]  ;;  %v2526_v4 = vld [vmem:[%s4801_s9 + $0x38] sm:$0xf0] }
  0x50   :  { %2497 = vmatmul.msk.bf16.vlgmr.msra.gmra.mxu3 %vm250_vm1, %v297_v33  ;;  %520 = vmatpush.bf16.msrb.mxu0 %v2557_v42  ;;  %v2521_v1 = vor.u32 %v3286_v60, %v2518_v62  ;;  %v2525_v2 = vor.u32 %v3289_v0, %v2524_v63  ;;  %v2529_v5 = vor.u32 %v3287_v3, %v2526_v4  ;;  %v2500_v6 = vld [vmem:[%s4801_s9] sm:$0xf]  ;;  %v3284_v7 = vld [vmem:[%s4801_s9 + $0xc] sm:$0xf0]  ;;  %v3282_v8 = vld [vmem:[%s4801_s9 + $0x4] sm:$0xf] }
  0x51   :  { %539 = vmatpush.bf16.msrb.mxu1 %v2561_v45  ;;  %v2501_v9 = vor.u32 %v3284_v7, %v2500_v6  ;;  %v2502_v10 = vld [vmem:[%s4801_s9 + $0x10] sm:$0xf0]  ;;  %v2508_v11 = vld [vmem:[%s4801_s9 + $0x8] sm:$0xf]  ;;  %v3285_v12 = vld [vmem:[%s4801_s9 + $0x14] sm:$0xf0] }
  0x52   :  { %483 = vmatpush.bf16.msrb.mxu2 %v2533_v49  ;;  %502 = vmatpush.bf16.msrb.mxu3 %v2537_v52  ;;  %v2505_v13 = vor.u32 %v3282_v8, %v2502_v10  ;;  %v2509_v14 = vor.u32 %v3285_v12, %v2508_v11  ;;  %v3283_v15 = vld [vmem:[%s4801_s9 + $0xc] sm:$0xf]  ;;  %v2510_v16 = vld [vmem:[%s4801_s9 + $0x18] sm:$0xf0]  ;;  %v4096_v18 = vld [vmem:[#allocation2] ss:$0 sm:$0xff] }
  0x53   :  { %v2513_v17 = vor.u32 %v3283_v15, %v2510_v16  ;;  %v4098_v19 = vld [vmem:[#allocation6] ss:$0 sm:$0xff]  ;;  %v2620_v21 = vld [vmem:[%s4803_s3 + $0x60] sm:$0xf]  ;;  %v3312_v22 = vld [vmem:[%s4803_s3 + $0x6c] sm:$0xf0] }
  0x54   :  { %521 = vmatpush.bf16.msrb.mxu0 %v2541_v56  ;;  %v3483_v20 = vld [vmem:[%s4802_s2] sm:$0xff]   ;;  %v2621_v24 = vor.u32 %v3312_v22, %v2620_v21  ;;  %v2622_v25 = vld [vmem:[%s4803_s3 + $0x70] sm:$0xf0]  ;;  %v3308_v27 = vld [vmem:[%s4803_s3 + $0x4c] sm:$0xf0] }
  0x55   :  { %540 = vmatpush.bf16.msrb.mxu1 %v2545_v57  ;;  %v3310_v23 = vld [vmem:[%s4803_s3 + $0x64] sm:$0xf]  ;;  %v2604_v26 = vld [vmem:[%s4803_s3 + $0x40] sm:$0xf]  ;;  %v2606_v31 = vld [vmem:[%s4803_s3 + $0x50] sm:$0xf0]  ;;  %v3484_v32 = vunpack.c.l.bf16 %v3483_v20  ;;  %v3485_v45 = vunpack.c.h.bf16 %v3483_v20 }
  0x56   :  { %484 = vmatpush.bf16.msrb.mxu2 %v2517_v61  ;;  %503 = vmatpush.bf16.msrb.mxu3 %v2521_v1  ;;  %v2625_v29 = vor.u32 %v3310_v23, %v2622_v25  ;;  %v3306_v30 = vld [vmem:[%s4803_s3 + $0x44] sm:$0xf]  ;;  %v2605_v33 = vor.u32 %v3308_v27, %v2604_v26  ;;  %v2628_v41 = vld [vmem:[%s4803_s3 + $0x68] sm:$0xf]  ;;  %v3313_v42 = vld [vmem:[%s4803_s3 + $0x74] sm:$0xf0] }
  0x57   :  { %v2609_v35 = vor.u32 %v3306_v30, %v2606_v31  ;;  %v3311_v43 = vld [vmem:[%s4803_s3 + $0x6c] sm:$0xf]  ;;  %v2629_v47 = vor.u32 %v3313_v42, %v2628_v41  ;;  %v2630_v48 = vld [vmem:[%s4803_s3 + $0x78] sm:$0xf0]  ;;  %v2588_v52 = vld [vmem:[%s4803_s3 + $0x20] sm:$0xf] }
  0x58   :  { %522 = vmatpush.bf16.msrb.mxu0 %v2525_v2  ;;  %v3507_v51 = vld [vmem:[%s4802_s2 + $0x8] sm:$0xff]   ;;  %v3304_v53 = vld [vmem:[%s4803_s3 + $0x2c] sm:$0xf0]  ;;  %v3302_v54 = vld [vmem:[%s4803_s3 + $0x24] sm:$0xf]  ;;  %v2633_v55 = vor.u32 %v3311_v43, %v2630_v48 }
  0x59   :  { %541 = vmatpush.bf16.msrb.mxu1 %v2529_v5  ;;  %v2589_v57 = vor.u32 %v3304_v53, %v2588_v52  ;;  %v2590_v58 = vld [vmem:[%s4803_s3 + $0x30] sm:$0xf0]  ;;  %v2612_v59 = vld [vmem:[%s4803_s3 + $0x48] sm:$0xf]  ;;  %v3309_v60 = vld [vmem:[%s4803_s3 + $0x54] sm:$0xf0]  ;;  %v3488_v15 = vunpack.c.l.bf16 %v3507_v51  ;;  %v3489_v20 = vunpack.c.h.bf16 %v3507_v51 }
  0x5a   :  { %485 = vmatpush.bf16.msrb.mxu2 %v2501_v9  ;;  %504 = vmatpush.bf16.msrb.mxu3 %v2505_v13  ;;  %v2593_v61 = vor.u32 %v3302_v54, %v2590_v58  ;;  %v2613_v62 = vor.u32 %v3309_v60, %v2612_v59  ;;  %v3307_v63 = vld [vmem:[%s4803_s3 + $0x4c] sm:$0xf]  ;;  %v2614_v0 = vld [vmem:[%s4803_s3 + $0x58] sm:$0xf0]  ;;  %v2572_v1 = vld [vmem:[%s4803_s3] sm:$0xf] }
  0x5b   :  { %v2617_v4 = vor.u32 %v3307_v63, %v2614_v0  ;;  %v3300_v5 = vld [vmem:[%s4803_s3 + $0xc] sm:$0xf0]  ;;  %v3298_v6 = vld [vmem:[%s4803_s3 + $0x4] sm:$0xf]  ;;  %v2574_v7 = vld [vmem:[%s4803_s3 + $0x10] sm:$0xf0] }
  0x5c   :  { %523 = vmatpush.bf16.msrb.mxu0 %v2509_v14  ;;  %v2573_v8 = vor.u32 %v3300_v5, %v2572_v1  ;;  %v2577_v9 = vor.u32 %v3298_v6, %v2574_v7  ;;  %v2596_v10 = vld [vmem:[%s4803_s3 + $0x28] sm:$0xf]  ;;  %v3305_v11 = vld [vmem:[%s4803_s3 + $0x34] sm:$0xf0]  ;;  %v3303_v12 = vld [vmem:[%s4803_s3 + $0x2c] sm:$0xf] }
  0x5d   :  { %542 = vmatpush.bf16.msrb.mxu1 %v2513_v17  ;;  %v2597_v16 = vor.u32 %v3305_v11, %v2596_v10  ;;  %v2598_v17 = vld [vmem:[%s4803_s3 + $0x38] sm:$0xf0]  ;;  %v2580_v23 = vld [vmem:[%s4803_s3 + $0x8] sm:$0xf]  ;;  %v3491_v48 = vld [vmem:[%s4760_s11] sm:$0xff]  }
  0x5e   :  { %688 = vmatpush.bf16.msra.mxu2 %v2621_v24  ;;  %707 = vmatpush.bf16.msra.mxu3 %v2625_v29  ;;  %v2601_v22 = vor.u32 %v3303_v12, %v2598_v17  ;;  %v3301_v24 = vld [vmem:[%s4803_s3 + $0x14] sm:$0xf0]  ;;  %v2582_v29 = vld [vmem:[%s4803_s3 + $0x18] sm:$0xf0]  ;;  %v3492_v51 = vunpack.c.l.bf16 %v3491_v48  ;;  %v2828_v0 = vld [vmem:[#allocation12 + $0x170] sm:$0xf] }
  0x5f   :  { %v3361_v1 = vld [vmem:[#allocation12 + $0x174] sm:$0xf0]  ;;  %v2820_v6 = vld [vmem:[#allocation12 + $0x160] sm:$0xf]  ;;  %v3359_v7 = vld [vmem:[#allocation12 + $0x164] sm:$0xf0] }
  0x60   :  { %726 = vmatpush.bf16.msra.mxu0 %v2629_v47  ;;  %v3375_v10 = vld [vmem:[#allocation12 + $0x1e4] sm:$0xf0]  ;;  %v2700_v11 = vld [vmem:[#allocation12 + $0x70] sm:$0xf]  ;;  %v3329_v12 = vld [vmem:[#allocation12 + $0x74] sm:$0xf0] }
  0x61   :  { %745 = vmatpush.bf16.msra.mxu1 %v2633_v55 }
  0x62   :  { %689 = vmatpush.bf16.msra.mxu2 %v2605_v33  ;;  %708 = vmatpush.bf16.msra.mxu3 %v2609_v35  ;;  %v2581_v35 = vor.u32 %v3301_v24, %v2580_v23  ;;  %v3373_v24 = vld [vmem:[#allocation12 + $0x1d4] sm:$0xf0] }
  0x64   :  { %727 = vmatpush.bf16.msra.mxu0 %v2613_v62 }
  0x65   :  { %746 = vmatpush.bf16.msra.mxu1 %v2617_v4  ;;  %v3377_v4 = vld [vmem:[#allocation12 + $0x1f4] sm:$0xf0] }
  0x66   :  { %690 = vmatpush.bf16.msra.mxu2 %v2589_v57  ;;  %709 = vmatpush.bf16.msra.mxu3 %v2593_v61 }
  0x68   :  { %728 = vmatpush.bf16.msra.mxu0 %v2597_v16  ;;  %v3345_v16 = vld [vmem:[#allocation12 + $0xf4] sm:$0xf0] }
  0x69   :  { %747 = vmatpush.bf16.msra.mxu1 %v2601_v22  ;;  %v2876_v22 = vld [vmem:[#allocation12 + $0x1d0] sm:$0xf] }
  0x6a   :  { %691 = vmatpush.bf16.msra.mxu2 %v2573_v8  ;;  %710 = vmatpush.bf16.msra.mxu3 %v2577_v9  ;;  %v2884_v8 = vld [vmem:[#allocation12 + $0x1e0] sm:$0xf]  ;;  %v2821_v9 = vor.u32 %v3359_v7, %v2820_v6  ;;  %v3337_v6 = vld [vmem:[#allocation12 + $0xb4] sm:$0xf0] }
  0x6c   :  { %729 = vmatpush.bf16.msra.mxu0 %v2581_v35  ;;  %v2868_v35 = vld [vmem:[#allocation12 + $0x1c0] sm:$0xf] }
  0xca   :  { %v270_v28 = vpop.f32.mrf.mxu0 }
  0xcb   :  { %v271_v36 = vadd.f32 %v4096_v18, %v270_v28  ;;  %v3299_v28 = vld [vmem:[%s4803_s3 + $0xc] sm:$0xf] }
  0xcc   :  { %v321_v34 = vpop.f32.mrf.mxu1 }
  0xcd   :  { %v322_v37 = vadd.f32 %v4098_v19, %v321_v34 }
  0xcf   :  { %v339_v38 = vmul.f32 %v3484_v32, %v322_v37  ;;  %v2585_v37 = vor.u32 %v3299_v28, %v2582_v29 }
  0xd1   :  { %v343_v39 = vadd.f32 %v339_v38, %v271_v36  ;;  %748 = vmatpush.bf16.msra.mxu1 %v2585_v37 }
  0xd2   :  { %v275_v40 = vpop.f32.mrf.mxu2  ;;  %v272_v49 = vpop.f32.mrf.mxu0 }
  0xd3   :  { %v347_v44 = vmax.f32 %v343_v39, 0.0  ;;  %v326_v46 = vpop.f32.mrf.mxu3  ;;  %v273_v2 = vadd.f32 %v4096_v18, %v272_v49  ;;  %v276_v30 = vadd.f32 %v4096_v18, %v275_v40  ;;  %v3493_v49 = vunpack.c.h.bf16 %v3491_v48 }
  0xd4   :  { %v323_v50 = vpop.f32.mrf.mxu1  ;;  %v327_v14 = vadd.f32 %v4098_v19, %v326_v46 }
  0xd5   :  { %v324_v56 = vadd.f32 %v4098_v19, %v323_v50  ;;  %v351_v25 = vpack.c.bf16 %v347_v44, %v347_v44 }
  0xd6   :  { %v341_v33 = vmul.f32 %v3488_v15, %v327_v14  ;;  %v2701_v14 = vor.u32 %v3329_v12, %v2700_v11  ;;  %v2764_v15 = vld [vmem:[#allocation12 + $0xf0] sm:$0xf]  ;;  %v3349_v11 = vld [vmem:[#allocation12 + $0x114] sm:$0xf0] }
  0xd7   :  { %v340_v3 = vmul.f32 %v3485_v45, %v324_v56  ;;  %v385_v38 = vunpack.c.l.b16 %v351_v25  ;;  %v558_v52 = vunpack.c.l.bf16 %v351_v25  ;;  %v3508_v56 = vld [vmem:[%s4760_s11 + $0x8] sm:$0xff]   ;;  %v2765_v17 = vor.u32 %v3345_v16, %v2764_v15  ;;  %v2844_v12 = vld [vmem:[#allocation12 + $0x190] sm:$0xf]  ;;  %v2660_v16 = vld [vmem:[#allocation12 + $0x20] sm:$0xf] }
  0xd8   :  { %v345_v41 = vadd.f32 %v341_v33, %v276_v30  ;;  %v3496_v57 = vunpack.c.l.bf16 %v3508_v56  ;;  %v3497_v59 = vunpack.c.h.bf16 %v3508_v56  ;;  %v2877_v25 = vor.u32 %v3373_v24, %v2876_v22  ;;  %v2804_v33 = vld [vmem:[#allocation12 + $0x140] sm:$0xf]  ;;  %v3335_v24 = vld [vmem:[#allocation12 + $0xa4] sm:$0xf0] }
  0xd9   :  { %v344_v13 = vadd.f32 %v340_v3, %v273_v2  ;;  %v566_v54 = vmul.f32 %v3492_v51, %v558_v52  ;;  %v2892_v2 = vld [vmem:[#allocation12 + $0x1f0] sm:$0xf]  ;;  %v2829_v3 = vor.u32 %v3361_v1, %v2828_v0  ;;  %v2676_v52 = vld [vmem:[#allocation12 + $0x40] sm:$0xf]  ;;  %v3367_v0 = vld [vmem:[#allocation12 + $0x1a4] sm:$0xf0] }
  0xda   :  { %v277_v21 = vpop.f32.mrf.mxu2  ;;  %v2893_v5 = vor.u32 %v3377_v4, %v2892_v2  ;;  %v2668_v2 = vld [vmem:[#allocation12 + $0x30] sm:$0xf] }
  0xdb   :  { %v348_v26 = vmax.f32 %v344_v13, 0.0  ;;  %v328_v27 = vpop.f32.mrf.mxu3  ;;  %v278_v34 = vadd.f32 %v4096_v18, %v277_v21  ;;  %v349_v18 = vmax.f32 %v345_v41, 0.0  ;;  %v2885_v13 = vor.u32 %v3375_v10, %v2884_v8  ;;  %v3357_v21 = vld [vmem:[#allocation12 + $0x154] sm:$0xf0]  ;;  %v2684_v41 = vld [vmem:[#allocation12 + $0x50] sm:$0xf] }
  0xdc   :  { %v329_v31 = vadd.f32 %v4098_v19, %v328_v27  ;;  %v3327_v27 = vld [vmem:[#allocation12 + $0x64] sm:$0xf0]  ;;  %v2732_v4 = vld [vmem:[#allocation12 + $0xb0] sm:$0xf] }
  0xdd   :  { %v352_v32 = vpack.c.bf16 %v348_v26, %v348_v26  ;;  %v353_v40 = vpack.c.bf16 %v349_v18, %v349_v18  ;;  %v2692_v26 = vld [vmem:[#allocation12 + $0x60] sm:$0xf]  ;;  %v2780_v10 = vld [vmem:[#allocation12 + $0x110] sm:$0xf] }
  0xde   :  { %v342_v36 = vmul.f32 %v3489_v20, %v329_v31  ;;  %v2812_v20 = vld [vmem:[#allocation12 + $0x150] sm:$0xf]  ;;  %v2693_v30 = vor.u32 %v3327_v27, %v2692_v26  ;;  %v2756_v31 = vld [vmem:[#allocation12 + $0xe0] sm:$0xf]  ;;  %v3347_v26 = vld [vmem:[#allocation12 + $0x104] sm:$0xf0] }
  0xdf   :  { %v386_v39 = vunpack.c.l.b16 %v352_v32  ;;  %v387_v45 = vunpack.c.l.b16 %v353_v40  ;;  %v559_v50 = vunpack.c.l.bf16 %v352_v32  ;;  %v560_v58 = vunpack.c.l.bf16 %v353_v40  ;;  %v3343_v32 = vld [vmem:[#allocation12 + $0xe4] sm:$0xf0]  ;;  %v2836_v27 = vld [vmem:[#allocation12 + $0x180] sm:$0xf] }
  0xe0   :  { %v346_v42 = vadd.f32 %v342_v36, %v278_v34  ;;  %v2813_v23 = vor.u32 %v3357_v21, %v2812_v20  ;;  %v3355_v34 = vld [vmem:[#allocation12 + $0x144] sm:$0xf0]  ;;  %v2757_v36 = vor.u32 %v3343_v32, %v2756_v31  ;;  %v2724_v20 = vld [vmem:[#allocation12 + $0xa0] sm:$0xf] }
  0xe1   :  { %v389_v43 = vpack.c.b16 %v386_v39, %v385_v38  ;;  %v567_v53 = vmul.f32 %v3493_v49, %v559_v50  ;;  %v568_v61 = vmul.f32 %v3496_v57, %v560_v58  ;;  %v2805_v37 = vor.u32 %v3355_v34, %v2804_v33  ;;  %v3371_v38 = vld [vmem:[#allocation12 + $0x1c4] sm:$0xf0]  ;;  %v2860_v49 = vld [vmem:[#allocation12 + $0x1b0] sm:$0xf]  ;;  %v3369_v50 = vld [vmem:[#allocation12 + $0x1b4] sm:$0xf0] }
  0xe2   :  { %v350_v19 = vmax.f32 %v346_v42, 0.0  ;;  %v2869_v39 = vor.u32 %v3371_v38, %v2868_v35  ;;  %v3325_v42 = vld [vmem:[#allocation12 + $0x54] sm:$0xf0]  ;;  %v2861_v51 = vor.u32 %v3369_v50, %v2860_v49  ;;  %v3339_v58 = vld [vmem:[#allocation12 + $0xc4] sm:$0xf0] }
  0xe3   :  { %2562 = vmatmul.msk.bf16.vlgmr.msrb.gmra.mxu2 %vm471_vm2, %v389_v43  ;;  %2564 = vmatmul.msk.bf16.vlgmr.msrb.gmra.mxu3 %vm471_vm2, %v389_v43  ;;  %v570_v55 = vpack.c.bf16 %v567_v53, %v566_v54  ;;  %v2685_v18 = vor.u32 %v3325_v42, %v2684_v41  ;;  %v3323_v53 = vld [vmem:[#allocation12 + $0x44] sm:$0xf0]  ;;  %v2740_v54 = vld [vmem:[#allocation12 + $0xc0] sm:$0xf]  ;;  %v2652_v34 = vld [vmem:[#allocation12 + $0x10] sm:$0xf] }
  0xe4   :  { %2566 = vmatmul.msk.bf16.vlgmr.msrb.gmra.mxu0 %vm471_vm2, %v389_v43  ;;  %2568 = vmatmul.msk.bf16.vlgmr.msrb.gmra.mxu1 %vm471_vm2, %v389_v43  ;;  %v354_v44 = vpack.c.bf16 %v350_v19, %v350_v19  ;;  %v2748_v43 = vld [vmem:[#allocation12 + $0xd0] sm:$0xf]  ;;  %v3341_v19 = vld [vmem:[#allocation12 + $0xd4] sm:$0xf0]  ;;  %v2677_v57 = vor.u32 %v3323_v53, %v2676_v52  ;;  %v3363_v32 = vld [vmem:[#allocation12 + $0x184] sm:$0xf0] }
  0xe5   :  { %1308 = vmatpush.bf16.msrb.mxu0 %v2829_v3  ;;  %1327 = vmatpush.bf16.msrb.mxu1 %v2893_v5  ;;  %v3321_v3 = vld [vmem:[#allocation12 + $0x34] sm:$0xf0]  ;;  %v2837_v33 = vor.u32 %v3363_v32, %v2836_v27  ;;  %v2644_v50 = vld [vmem:[#allocation12] sm:$0xf]  ;;  %v2814_v32 = vld [vmem:[#allocation12 + $0x158] sm:$0xf0] }
  0xe6   :  { %v388_v46 = vunpack.c.l.b16 %v354_v44  ;;  %v561_v60 = vunpack.c.l.bf16 %v354_v44  ;;  %1270 = vmatpush.bf16.msrb.mxu2 %v2701_v14  ;;  %1289 = vmatpush.bf16.msrb.mxu3 %v2765_v17  ;;  %v2669_v5 = vor.u32 %v3321_v3, %v2668_v2  ;;  %v3365_v14 = vld [vmem:[#allocation12 + $0x194] sm:$0xf0]  ;;  %v3319_v17 = vld [vmem:[#allocation12 + $0x24] sm:$0xf0]  ;;  %v2708_v52 = vld [vmem:[#allocation12 + $0x80] sm:$0xf] }
  0xe7   :  { %v2845_v15 = vor.u32 %v3365_v14, %v2844_v12  ;;  %v3317_v35 = vld [vmem:[#allocation12 + $0x14] sm:$0xf0]  ;;  %v4270_v3 = vld [vmem:[#allocation10 + $0x8] sm:$0xff]  ;;  %v3344_v12 = vld [vmem:[#allocation12 + $0xf4] sm:$0xf] }
  0xe8   :  { %v390_v47 = vpack.c.b16 %v388_v46, %v387_v45  ;;  %v569_v62 = vmul.f32 %v3497_v59, %v561_v60  ;;  %v2749_v45 = vor.u32 %v3341_v19, %v2748_v43  ;;  %v2796_v46 = vld [vmem:[#allocation12 + $0x130] sm:$0xf]  ;;  %v2788_v59 = vld [vmem:[#allocation12 + $0x120] sm:$0xf]  ;;  %v3351_v60 = vld [vmem:[#allocation12 + $0x124] sm:$0xf0]  ;;  %v2653_v38 = vor.u32 %v3317_v35, %v2652_v34 }
  0xe9   :  { %1309 = vmatpush.bf16.msrb.mxu0 %v2821_v9  ;;  %1328 = vmatpush.bf16.msrb.mxu1 %v2885_v13  ;;  %v2733_v9 = vor.u32 %v3337_v6, %v2732_v4  ;;  %v2781_v13 = vor.u32 %v3349_v11, %v2780_v10  ;;  %v2830_v19 = vld [vmem:[#allocation12 + $0x178] sm:$0xf0]  ;;  %v2886_v6 = vld [vmem:[#allocation12 + $0x1e8] sm:$0xf0]  ;;  %v3328_v10 = vld [vmem:[#allocation12 + $0x74] sm:$0xf]  ;;  %v771_v27 = vunpack.c.h.bf16 %v4270_v3 }
  0xea   :  { %v571_v63 = vpack.c.bf16 %v569_v62, %v568_v61  ;;  %1271 = vmatpush.bf16.msrb.mxu2 %v2693_v30  ;;  %1290 = vmatpush.bf16.msrb.mxu3 %v2757_v36  ;;  %v2852_v61 = vld [vmem:[#allocation12 + $0x1a0] sm:$0xf]  ;;  %v2741_v62 = vor.u32 %v3339_v58, %v2740_v54  ;;  %v2725_v30 = vor.u32 %v3335_v24, %v2724_v20  ;;  %v2716_v36 = vld [vmem:[#allocation12 + $0x90] sm:$0xf]  ;;  %v2702_v11 = vld [vmem:[#allocation12 + $0x78] sm:$0xf0] }
  0xeb   :  { %v2853_v1 = vor.u32 %v3367_v0, %v2852_v61  ;;  %v3331_v61 = vld [vmem:[#allocation12 + $0x84] sm:$0xf0]  ;;  %v3374_v0 = vld [vmem:[#allocation12 + $0x1e4] sm:$0xf]  ;;  %v2705_v20 = vor.u32 %v3328_v10, %v2702_v11 }
  0xec   :  { %v2709_v4 = vor.u32 %v3331_v61, %v2708_v52  ;;  %v2758_v52 = vld [vmem:[#allocation12 + $0xe8] sm:$0xf0] }
  0xed   :  { %1310 = vmatpush.bf16.msrb.mxu0 %v2813_v23  ;;  %1329 = vmatpush.bf16.msrb.mxu1 %v2877_v25  ;;  %v2661_v23 = vor.u32 %v3319_v17, %v2660_v16  ;;  %v2772_v25 = vld [vmem:[#allocation12 + $0x100] sm:$0xf]  ;;  %v4282_v17 = vld [vmem:[#allocation10 + $0x18] sm:$0xff] }
  0xee   :  { %1272 = vmatpush.bf16.msrb.mxu2 %v2685_v18  ;;  %1291 = vmatpush.bf16.msrb.mxu3 %v2749_v45  ;;  %v2773_v31 = vor.u32 %v3347_v26, %v2772_v25  ;;  %v3360_v18 = vld [vmem:[#allocation12 + $0x174] sm:$0xf]  ;;  %v4280_v16 = vld [vmem:[#allocation10] sm:$0xff]  ;;  %v770_v26 = vunpack.c.l.bf16 %v4270_v3 }
  0xef   :  { %v3376_v45 = vld [vmem:[#allocation12 + $0x1f4] sm:$0xf]  ;;  %v3370_v3 = vld [vmem:[#allocation12 + $0x1c4] sm:$0xf] }
  0xf1   :  { %1311 = vmatpush.bf16.msrb.mxu0 %v2805_v37  ;;  %1330 = vmatpush.bf16.msrb.mxu1 %v2869_v39  ;;  %v371_v37 = vld [vmem:[#allocation7] sm:$0xf] }
  0xf2   :  { %1273 = vmatpush.bf16.msrb.mxu2 %v2677_v57  ;;  %1292 = vmatpush.bf16.msrb.mxu3 %v2741_v62  ;;  %v3333_v39 = vld [vmem:[#allocation12 + $0x94] sm:$0xf0]  ;;  %v4256_v53 = vperm.slane %v371_v37, 2  ;;  %v4258_v54 = vperm.slane %v371_v37, 3  ;;  %v4260_v57 = vperm.slane %v371_v37, 0 }
  0xf3   :  { %2563 = vmatmul.msk.bf16.gmra.mxu2 %vm471_vm2, %v390_v47  ;;  %2565 = vmatmul.msk.bf16.gmra.mxu3 %vm471_vm2, %v390_v47  ;;  %v2717_v43 = vor.u32 %v3333_v39, %v2716_v36  ;;  %v3358_v62 = vld [vmem:[#allocation12 + $0x164] sm:$0xf]  ;;  %v4304_v36 = vld [vmem:[#allocation10 + $0x10] sm:$0xff] }
  0xf4   :  { %2567 = vmatmul.msk.bf16.gmra.mxu0 %vm471_vm2, %v390_v47  ;;  %2569 = vmatmul.msk.bf16.gmra.mxu1 %vm471_vm2, %v390_v47  ;;  %v3353_v47 = vld [vmem:[#allocation12 + $0x134] sm:$0xf0] }
  0xf5   :  { %v2797_v48 = vor.u32 %v3353_v47, %v2796_v46  ;;  %1331 = vmatpush.bf16.msrb.mxu1 %v2861_v51  ;;  %v588_v46 = vld [vmem:[#allocation9] sm:$0xf]  ;;  %v2833_v47 = vor.u32 %v3360_v18, %v2830_v19  ;;  %v3315_v51 = vld [vmem:[#allocation12 + $0x4] sm:$0xf0]  ;;  %v3326_v19 = vld [vmem:[#allocation12 + $0x64] sm:$0xf] }
  0xf6   :  { %1274 = vmatpush.bf16.msrb.mxu2 %v2669_v5  ;;  %1293 = vmatpush.bf16.msrb.mxu3 %v2733_v9  ;;  %v4268_v2 = vperm.slane %v588_v46, 2  ;;  %v2889_v9 = vor.u32 %v3374_v0, %v2886_v6  ;;  %v4276_v14 = vperm.slane %v588_v46, 3  ;;  %v4302_v35 = vperm.slane %v588_v46, 1  ;;  %v2806_v0 = vld [vmem:[#allocation12 + $0x148] sm:$0xf0] }
  0xf7   :  { %1312 = vmatpush.bf16.msrb.mxu0 %v2797_v48  ;;  %v2894_v48 = vld [vmem:[#allocation12 + $0x1f8] sm:$0xf0]  ;;  %v773_v6 = vunpack.c.h.bf16 %v4304_v36 }
  0xf8   :  { %v2897_v49 = vor.u32 %v3376_v45, %v2894_v48  ;;  %v3342_v45 = vld [vmem:[#allocation12 + $0xe4] sm:$0xf] }
  0xf9   :  { %1332 = vmatpush.bf16.msrb.mxu1 %v2853_v1  ;;  %v4266_v1 = vperm.slane %v371_v37, 1 }
  0xfa   :  { %1275 = vmatpush.bf16.msrb.mxu2 %v2661_v23  ;;  %1294 = vmatpush.bf16.msrb.mxu3 %v2725_v30  ;;  %v2766_v23 = vld [vmem:[#allocation12 + $0xf8] sm:$0xf0] }
  0xfb   :  { %v2769_v30 = vor.u32 %v3344_v12, %v2766_v23  ;;  %v3324_v23 = vld [vmem:[#allocation12 + $0x54] sm:$0xf] }
  0xfd   :  { %1333 = vmatpush.bf16.msrb.mxu1 %v2845_v15  ;;  %v4278_v15 = vperm.slane %v588_v46, 0 }
  0xfe   :  { %1276 = vmatpush.bf16.msrb.mxu2 %v2653_v38  ;;  %1295 = vmatpush.bf16.msrb.mxu3 %v2717_v43  ;;  %v2878_v38 = vld [vmem:[#allocation12 + $0x1d8] sm:$0xf0]  ;;  %v768_v43 = vunpack.c.l.bf16 %v4280_v16 }
 0x101   :  { %1334 = vmatpush.bf16.msrb.mxu1 %v2837_v33  ;;  %v3372_v33 = vld [vmem:[#allocation12 + $0x1d4] sm:$0xf] }
 0x102   :  { %1296 = vmatpush.bf16.msrb.mxu3 %v2709_v4  ;;  %v2881_v18 = vor.u32 %v3372_v33, %v2878_v38  ;;  %v2750_v38 = vld [vmem:[#allocation12 + $0xd8] sm:$0xf0] }
 0x103   :  { %2634 = vmatmul.msk.bf16.vlgmr.msra.gmra.mxu2 %vm471_vm2, %v570_v55  ;;  %2636 = vmatmul.msk.bf16.vlgmr.msra.gmra.mxu3 %vm471_vm2, %v570_v55 }
 0x104   :  { %2638 = vmatmul.msk.bf16.vlgmr.msra.gmra.mxu0 %vm471_vm2, %v570_v55  ;;  %2640 = vmatmul.msk.bf16.vlgmr.msra.gmra.mxu1 %vm471_vm2, %v570_v55 }
 0x105   :  { %1403 = vmatpush.bf16.msra.mxu1 %v2897_v49  ;;  %v774_v49 = vunpack.c.l.bf16 %v4282_v17 }
 0x106   :  { %1365 = vmatpush.bf16.msra.mxu3 %v2769_v30  ;;  %v2686_v30 = vld [vmem:[#allocation12 + $0x58] sm:$0xf0] }
 0x109   :  { %1404 = vmatpush.bf16.msra.mxu1 %v2889_v9  ;;  %v2870_v9 = vld [vmem:[#allocation12 + $0x1c8] sm:$0xf0] }
 0x10d   :  { %1405 = vmatpush.bf16.msra.mxu1 %v2881_v18 }
 0x113   :  { %2635 = vmatmul.msk.bf16.gmra.mxu2 %vm471_vm2, %v571_v63  ;;  %2637 = vmatmul.msk.bf16.gmra.mxu3 %vm471_vm2, %v571_v63 }
 0x114   :  { %2639 = vmatmul.msk.bf16.gmra.mxu0 %vm471_vm2, %v571_v63  ;;  %2641 = vmatmul.msk.bf16.gmra.mxu1 %vm471_vm2, %v571_v63  ;;  %v2789_v63 = vor.u32 %v3351_v60, %v2788_v59  ;;  %v2645_v60 = vor.u32 %v3315_v51, %v2644_v50  ;;  %v4318_v50 = vld [vmem:[#allocation10 + $0x28] sm:$0xff] }
 0x115   :  { %v779_v33 = vunpack.c.h.bf16 %v4318_v50 }
 0x116   :  { %1313 = vmatpush.bf16.msrb.mxu0 %v2789_v63  ;;  %v2822_v63 = vld [vmem:[#allocation12 + $0x168] sm:$0xf0]  ;;  %1277 = vmatpush.bf16.msrb.mxu2 %v2645_v60 }
 0x117   :  { %v2825_v5 = vor.u32 %v3358_v62, %v2822_v63  ;;  %v2761_v62 = vor.u32 %v3342_v45, %v2758_v52  ;;  %v3354_v63 = vld [vmem:[#allocation12 + $0x144] sm:$0xf]  ;;  %v3352_v45 = vld [vmem:[#allocation12 + $0x134] sm:$0xf] }
 0x119   :  { %1366 = vmatpush.bf16.msra.mxu3 %v2761_v62 }
 0x11a   :  { %1314 = vmatpush.bf16.msrb.mxu0 %v2781_v13  ;;  %1346 = vmatpush.bf16.msra.mxu2 %v2705_v20  ;;  %v2873_v20 = vor.u32 %v3370_v3, %v2870_v9  ;;  %v3322_v3 = vld [vmem:[#allocation12 + $0x44] sm:$0xf] }
 0x11c   :  { %1406 = vmatpush.bf16.msra.mxu1 %v2873_v20 }
 0x11e   :  { %1315 = vmatpush.bf16.msrb.mxu0 %v2773_v31  ;;  %v3356_v31 = vld [vmem:[#allocation12 + $0x154] sm:$0xf] }
 0x11f   :  { %v2817_v37 = vor.u32 %v3356_v31, %v2814_v32  ;;  %v3340_v31 = vld [vmem:[#allocation12 + $0xd4] sm:$0xf]  ;;  %v778_v32 = vunpack.c.l.bf16 %v4318_v50 }
 0x122   :  { %1384 = vmatpush.bf16.msra.mxu0 %v2833_v47 }
 0x126   :  { %1385 = vmatpush.bf16.msra.mxu0 %v2825_v5  ;;  %v772_v5 = vunpack.c.l.bf16 %v4304_v36  ;;  %v3316_v36 = vld [vmem:[#allocation12 + $0x14] sm:$0xf] }
 0x12a   :  { %1386 = vmatpush.bf16.msra.mxu0 %v2817_v37  ;;  %v4342_v37 = vld [vmem:[#allocation10 + $0x20] sm:$0xff] }
 0x12b   :  { %v777_v20 = vunpack.c.h.bf16 %v4342_v37 }
 0x161   :  { %v4232_v28 = vpop.f32.mrf.mxu0  ;;  %v4234_v29 = vpop.f32.mrf.mxu1 }
 0x162   :  { %v4274_v13 = vadd.f32 %v4232_v28, %v4256_v53  ;;  %v4286_v24 = vadd.f32 %v4234_v29, %v4258_v54 }
 0x166   :  { %v4236_v40 = vpop.f32.mrf.mxu2  ;;  %v4238_v44 = vpop.f32.mrf.mxu3 }
 0x167   :  { %v4296_v34 = vadd.f32 %v4236_v40, %v4260_v57  ;;  %v4300_v29 = vadd.f32 %v4238_v44, %v4266_v1  ;;  %v769_v40 = vunpack.c.h.bf16 %v4280_v16  ;;  %v2694_v44 = vld [vmem:[#allocation12 + $0x68] sm:$0xf0]  ;;  %v3366_v16 = vld [vmem:[#allocation12 + $0x1a4] sm:$0xf] }
 0x168   :  { %v2697_v51 = vor.u32 %v3326_v19, %v2694_v44  ;;  %v2753_v44 = vor.u32 %v3340_v31, %v2750_v38  ;;  %v2742_v31 = vld [vmem:[#allocation12 + $0xc8] sm:$0xf0] }
 0x169   :  { %v4240_v55 = vpop.f32.mrf.mxu0  ;;  %v4242_v56 = vpop.f32.mrf.mxu1 }
 0x16a   :  { %v4308_v39 = vadd.f32 %v4240_v55, %v4256_v53  ;;  %v4314_v46 = vadd.f32 %v4242_v56, %v4258_v54  ;;  %v775_v55 = vunpack.c.h.bf16 %v4282_v17  ;;  %1347 = vmatpush.bf16.msra.mxu2 %v2697_v51  ;;  %1367 = vmatpush.bf16.msra.mxu3 %v2753_v44 }
 0x16e   :  { %v4244_v7 = vpop.f32.mrf.mxu2  ;;  %v4246_v8 = vpop.f32.mrf.mxu3 }
 0x16f   :  { %v4322_v60 = vadd.f32 %v4244_v7, %v4260_v57  ;;  %v4328_v4 = vadd.f32 %v4246_v8, %v4266_v1  ;;  %v2809_v7 = vor.u32 %v3354_v63, %v2806_v0  ;;  %v776_v63 = vunpack.c.l.bf16 %v4342_v37 }
 0x171   :  { %v4248_v21 = vpop.f32.mrf.mxu0  ;;  %v4250_v22 = vpop.f32.mrf.mxu1  ;;  %1387 = vmatpush.bf16.msra.mxu0 %v2809_v7  ;;  %v2678_v7 = vld [vmem:[#allocation12 + $0x48] sm:$0xf0] }
 0x172   :  { %v4334_v10 = vadd.f32 %v4248_v21, %v4256_v53  ;;  %v4338_v8 = vadd.f32 %v4250_v22, %v4258_v54  ;;  %v2689_v21 = vor.u32 %v3324_v23, %v2686_v30  ;;  %v2681_v23 = vor.u32 %v3322_v3, %v2678_v7  ;;  %v3338_v30 = vld [vmem:[#allocation12 + $0xc4] sm:$0xf] }
 0x174   :  { %1348 = vmatpush.bf16.msra.mxu2 %v2689_v21  ;;  %v3350_v21 = vld [vmem:[#allocation12 + $0x124] sm:$0xf] }
 0x176   :  { %v4252_v41 = vpop.f32.mrf.mxu2  ;;  %v4254_v42 = vpop.f32.mrf.mxu3 }
 0x177   :  { %v4352_v51 = vadd.f32 %v4254_v42, %v4266_v1 }
 0x178   :  { %1349 = vmatpush.bf16.msra.mxu2 %v2681_v23  ;;  %v2846_v23 = vld [vmem:[#allocation12 + $0x198] sm:$0xf0] }
 0x179   :  { %v4262_v58 = vpop.f32.mrf.mxu0  ;;  %v4264_v59 = vpop.f32.mrf.mxu1 }
 0x17e   :  { %v4288_v25 = vpop.f32.mrf.mxu2  ;;  %v4290_v28 = vpop.f32.mrf.mxu3 }
 0x181   :  { %v731_v47 = vpop.f32.mrf.mxu0  ;;  %v750_v48 = vpop.f32.mrf.mxu1 }
 0x182   :  { %v732_v61 = vadd.f32 %v731_v47, %v4268_v2  ;;  %v751_v56 = vadd.f32 %v750_v48, %v4276_v14  ;;  %v2798_v47 = vld [vmem:[#allocation12 + $0x138] sm:$0xf0]  ;;  %v3368_v48 = vld [vmem:[#allocation12 + $0x1b4] sm:$0xf] }
 0x184   :  { %v786_v11 = vmul.f32 %v770_v26, %v732_v61  ;;  %v787_v12 = vmul.f32 %v771_v27, %v751_v56  ;;  %v4346_v26 = vadd.f32 %v4252_v41, %v4260_v57  ;;  %v4356_v61 = vld [vmem:[#allocation10 + $0x38] sm:$0xff] }
 0x186   :  { %v802_v27 = vadd.f32 %v786_v11, %v4274_v13  ;;  %v803_v18 = vadd.f32 %v787_v12, %v4286_v24  ;;  %v693_v19 = vpop.f32.mrf.mxu2  ;;  %v712_v22 = vpop.f32.mrf.mxu3  ;;  %v2801_v13 = vor.u32 %v3352_v45, %v2798_v47  ;;  %v2862_v24 = vld [vmem:[#allocation12 + $0x1b8] sm:$0xf0] }
 0x187   :  { %v694_v52 = vadd.f32 %v693_v19, %v4278_v15  ;;  %v713_v41 = vadd.f32 %v712_v22, %v4302_v35  ;;  %v2865_v0 = vor.u32 %v3368_v48, %v2862_v24  ;;  %v2790_v19 = vld [vmem:[#allocation12 + $0x128] sm:$0xf0]  ;;  %v4372_v48 = vadd.f32 %v4262_v58, %v4256_v53  ;;  %v3320_v24 = vld [vmem:[#allocation12 + $0x34] sm:$0xf]  ;;  %v2734_v53 = vld [vmem:[#allocation12 + $0xb8] sm:$0xf0] }
 0x188   :  { %v818_v56 = vmax.f32 %v802_v27, 0.0  ;;  %v819_v62 = vmax.f32 %v803_v18, 0.0  ;;  %1388 = vmatpush.bf16.msra.mxu0 %v2801_v13  ;;  %v2793_v45 = vor.u32 %v3350_v21, %v2790_v19  ;;  %v782_v13 = vunpack.c.l.bf16 %v4356_v61  ;;  %v3348_v58 = vld [vmem:[#allocation12 + $0x114] sm:$0xf] }
 0x189   :  { %v784_v42 = vmul.f32 %v768_v43, %v694_v52  ;;  %v785_v9 = vmul.f32 %v769_v40, %v713_v41  ;;  %v733_v11 = vpop.f32.mrf.mxu0  ;;  %v752_v12 = vpop.f32.mrf.mxu1  ;;  %1407 = vmatpush.bf16.msra.mxu1 %v2865_v0  ;;  %v2745_v43 = vor.u32 %v3338_v30, %v2742_v31  ;;  %v2854_v40 = vld [vmem:[#allocation12 + $0x1a8] sm:$0xf0]  ;;  %v783_v0 = vunpack.c.h.bf16 %v4356_v61  ;;  %v3409_v61 = vld [vmem:[#allocation13 + $0xf4] sm:$0xf0] }
 0x18a   :  { %v4364_v38 = vpack.c.bf16 %v819_v62, %v818_v56  ;;  %v734_v27 = vadd.f32 %v733_v11, %v4268_v2  ;;  %v753_v18 = vadd.f32 %v752_v12, %v4276_v14  ;;  %v2857_v47 = vor.u32 %v3366_v16, %v2854_v40  ;;  %v3336_v56 = vld [vmem:[#allocation12 + $0xb4] sm:$0xf]  ;;  %v2782_v11 = vld [vmem:[#allocation12 + $0x118] sm:$0xf0] }
 0x18b   :  { %v800_v22 = vadd.f32 %v784_v42, %v4296_v34  ;;  %v801_v44 = vadd.f32 %v785_v9, %v4300_v29  ;;  %1368 = vmatpush.bf16.msra.mxu3 %v2745_v43  ;;  %v2670_v34 = vld [vmem:[#allocation12 + $0x38] sm:$0xf0]  ;;  %v2737_v9 = vor.u32 %v3336_v56, %v2734_v53  ;;  %v3364_v12 = vld [vmem:[#allocation12 + $0x194] sm:$0xf]  ;;  %v2774_v56 = vld [vmem:[#allocation12 + $0x108] sm:$0xf0] }
 0x18c   :  { %v790_v52 = vmul.f32 %v774_v49, %v734_v27  ;;  %v791_v41 = vmul.f32 %v775_v55, %v753_v18  ;;  %1389 = vmatpush.bf16.msra.mxu0 %v2793_v45  ;;  %v2673_v3 = vor.u32 %v3320_v24, %v2670_v34  ;;  %v920_v42 = vunpack.c.l.b16 %v4364_v38  ;;  %v2662_v18 = vld [vmem:[#allocation12 + $0x28] sm:$0xf0] }
 0x18d   :  { %v816_v29 = vmax.f32 %v800_v22, 0.0  ;;  %v817_v62 = vmax.f32 %v801_v44, 0.0  ;;  %1408 = vmatpush.bf16.msra.mxu1 %v2857_v47  ;;  %v2785_v27 = vor.u32 %v3348_v58, %v2782_v11  ;;  %v2849_v16 = vor.u32 %v3364_v12, %v2846_v23  ;;  %v2726_v22 = vld [vmem:[#allocation12 + $0xa8] sm:$0xf0]  ;;  %v3346_v44 = vld [vmem:[#allocation12 + $0x104] sm:$0xf] }
 0x18e   :  { %v806_v7 = vadd.f32 %v790_v52, %v4308_v39  ;;  %v807_v49 = vadd.f32 %v791_v41, %v4314_v46  ;;  %v695_v17 = vpop.f32.mrf.mxu2  ;;  %v714_v55 = vpop.f32.mrf.mxu3  ;;  %1350 = vmatpush.bf16.msra.mxu2 %v2673_v3  ;;  %v3318_v39 = vld [vmem:[#allocation12 + $0x24] sm:$0xf]  ;;  %v921_v24 = vunpack.c.h.b16 %v4364_v38  ;;  %v2718_v11 = vld [vmem:[#allocation12 + $0x98] sm:$0xf0] }
 0x18f   :  { %v4383_v30 = vpack.c.bf16 %v817_v62, %v816_v29  ;;  %v696_v31 = vadd.f32 %v695_v17, %v4278_v15  ;;  %v715_v21 = vadd.f32 %v714_v55, %v4302_v35  ;;  %v3334_v46 = vld [vmem:[#allocation12 + $0xa4] sm:$0xf]  ;;  %1369 = vmatpush.bf16.msra.mxu3 %v2737_v9  ;;  %v2665_v40 = vor.u32 %v3318_v39, %v2662_v18  ;;  %v2838_v62 = vld [vmem:[#allocation12 + $0x188] sm:$0xf0] }
 0x190   :  { %v822_v43 = vmax.f32 %v806_v7, 0.0  ;;  %v823_v19 = vmax.f32 %v807_v49, 0.0  ;;  %1390 = vmatpush.bf16.msra.mxu0 %v2785_v27  ;;  %v3362_v29 = vld [vmem:[#allocation12 + $0x184] sm:$0xf]  ;;  %v3332_v7 = vld [vmem:[#allocation12 + $0x94] sm:$0xf]  ;;  %v2777_v55 = vor.u32 %v3346_v44, %v2774_v56 }
 0x191   :  { %v788_v45 = vmul.f32 %v772_v5, %v696_v31  ;;  %v789_v47 = vmul.f32 %v773_v6, %v715_v21  ;;  %v736_v52 = vpop.f32.mrf.mxu0  ;;  %v755_v41 = vpop.f32.mrf.mxu1  ;;  %v918_v34 = vunpack.c.l.b16 %v4383_v30  ;;  %1409 = vmatpush.bf16.msra.mxu1 %v2849_v16  ;;  %v2729_v5 = vor.u32 %v3334_v46, %v2726_v22  ;;  %v2654_v6 = vld [vmem:[#allocation12 + $0x18] sm:$0xf0]  ;;  %v3425_v16 = vld [vmem:[#allocation13 + $0x174] sm:$0xf0]  ;;  %v2646_v56 = vld [vmem:[#allocation12 + $0x8] sm:$0xf0] }
 0x192   :  { %v4393_v3 = vpack.c.bf16 %v823_v19, %v822_v43  ;;  %v737_v53 = vadd.f32 %v736_v52, %v4268_v2  ;;  %v756_v58 = vadd.f32 %v755_v41, %v4276_v14  ;;  %1351 = vmatpush.bf16.msra.mxu2 %v2665_v40  ;;  %v2841_v9 = vor.u32 %v3362_v29, %v2838_v62  ;;  %v3084_v19 = vld [vmem:[#allocation13 + $0x170] sm:$0xf] }
 0x193   :  { %v804_v49 = vadd.f32 %v788_v45, %v4322_v60  ;;  %v805_v17 = vadd.f32 %v789_v47, %v4328_v4  ;;  %1370 = vmatpush.bf16.msra.mxu3 %v2729_v5  ;;  %v2657_v60 = vor.u32 %v3316_v36, %v2654_v6  ;;  %v2721_v4 = vor.u32 %v3332_v7, %v2718_v11  ;;  %v3148_v40 = vld [vmem:[#allocation13 + $0x1f0] sm:$0xf]  ;;  %v3330_v7 = vld [vmem:[#allocation12 + $0x84] sm:$0xf] }
 0x194   :  { %v794_v12 = vmul.f32 %v778_v32, %v737_v53  ;;  %v795_v23 = vmul.f32 %v779_v33, %v756_v58  ;;  %v924_v31 = vunpack.c.l.b16 %v4393_v3  ;;  %v925_v21 = vunpack.c.h.b16 %v4393_v3  ;;  %1391 = vmatpush.bf16.msra.mxu0 %v2777_v55  ;;  %v4430_v6 = vld [vmem:[#allocation10 + $0x30] sm:$0xff]  ;;  %v3076_v55 = vld [vmem:[#allocation13 + $0x160] sm:$0xf] }
 0x195   :  { %v820_v27 = vmax.f32 %v804_v49, 0.0  ;;  %v821_v39 = vmax.f32 %v805_v17, 0.0  ;;  %1410 = vmatpush.bf16.msra.mxu1 %v2841_v9  ;;  %v3085_v45 = vor.u32 %v3425_v16, %v3084_v19  ;;  %v919_v52 = vunpack.c.h.b16 %v4383_v30  ;;  %v3423_v9 = vld [vmem:[#allocation13 + $0x164] sm:$0xf0] }
 0x196   :  { %v4406_v18 = vadd.f32 %v794_v12, %v4334_v10  ;;  %v4409_v46 = vadd.f32 %v795_v23, %v4338_v8  ;;  %v698_v32 = vpop.f32.mrf.mxu2  ;;  %v717_v43 = vpop.f32.mrf.mxu3  ;;  %v4411_v50 = vpack.c.b16 %v924_v31, %v920_v42  ;;  %v4413_v33 = vpack.c.b16 %v925_v21, %v921_v24  ;;  %1352 = vmatpush.bf16.msra.mxu2 %v2657_v60  ;;  %v3441_v8 = vld [vmem:[#allocation13 + $0x1f4] sm:$0xf0]  ;;  %v3314_v24 = vld [vmem:[#allocation12 + $0x4] sm:$0xf] }
 0x197   :  { %v4415_v22 = vpack.c.bf16 %v821_v39, %v820_v27  ;;  %v699_v44 = vadd.f32 %v698_v32, %v4278_v15  ;;  %v718_v10 = vadd.f32 %v717_v43, %v4302_v35  ;;  %v3149_v41 = vor.u32 %v3441_v8, %v3148_v40  ;;  %1371 = vmatpush.bf16.msra.mxu3 %v2721_v4  ;;  %v3393_v27 = vld [vmem:[#allocation13 + $0x74] sm:$0xf0]  ;;  %v3020_v39 = vld [vmem:[#allocation13 + $0xf0] sm:$0xf] }
 0x198   :  { %v826_v47 = vmax.f32 %v4406_v18, 0.0  ;;  %v827_v42 = vmax.f32 %v4409_v46, 0.0  ;;  %1316 = vmatmul.bf16.vlgmr.msrb.gmra.mxu0 %v4411_v50  ;;  %1335 = vmatmul.bf16.vlgmr.msrb.gmra.mxu1 %v4413_v33  ;;  %v552_v49 = vadd.f32 %v4264_v59, %v4258_v54  ;;  %v2649_v37 = vor.u32 %v3314_v24, %v2646_v56  ;;  %v3140_v59 = vld [vmem:[#allocation13 + $0x1e0] sm:$0xf]  ;;  %v3421_v40 = vld [vmem:[#allocation13 + $0x154] sm:$0xf0] }
 0x199   :  { %v792_v29 = vmul.f32 %v776_v63, %v699_v44  ;;  %v793_v62 = vmul.f32 %v777_v20, %v718_v10  ;;  %v738_v53 = vpop.f32.mrf.mxu0  ;;  %v757_v58 = vpop.f32.mrf.mxu1  ;;  %v922_v5 = vunpack.c.l.b16 %v4415_v22  ;;  %v923_v36 = vunpack.c.h.b16 %v4415_v22  ;;  %1914 = vmatpush.bf16.msrb.mxu0 %v3085_v45  ;;  %1933 = vmatpush.bf16.msrb.mxu1 %v3149_v41  ;;  %v2710_v20 = vld [vmem:[#allocation12 + $0x88] sm:$0xf0]  ;;  %v3132_v44 = vld [vmem:[#allocation13 + $0x1d0] sm:$0xf]  ;;  %v3437_v10 = vld [vmem:[#allocation13 + $0x1d4] sm:$0xf0] }
 0x19a   :  { %v739_v17 = vadd.f32 %v738_v53, %v4268_v2  ;;  %v758_v63 = vadd.f32 %v757_v58, %v4276_v14  ;;  %v3439_v2 = vld [vmem:[#allocation13 + $0x1e4] sm:$0xf0]  ;;  %v781_v21 = vunpack.c.h.bf16 %v4430_v6  ;;  %1353 = vmatpush.bf16.msra.mxu2 %v2649_v37  ;;  %v3077_v4 = vor.u32 %v3423_v9, %v3076_v55  ;;  %v2948_v41 = vld [vmem:[#allocation13 + $0x60] sm:$0xf]  ;;  %v3389_v55 = vld [vmem:[#allocation13 + $0x54] sm:$0xf0] }
 0x19b   :  { %v4437_v11 = vadd.f32 %v792_v29, %v4346_v26  ;;  %v4440_v12 = vadd.f32 %v793_v62, %v4352_v51  ;;  %v4444_v23 = vpack.c.b16 %v922_v5, %v918_v34  ;;  %v4446_v54 = vpack.c.b16 %v923_v36, %v919_v52  ;;  %v2956_v51 = vld [vmem:[#allocation13 + $0x70] sm:$0xf]  ;;  %v3391_v24 = vld [vmem:[#allocation13 + $0x64] sm:$0xf0]  ;;  %v3012_v56 = vld [vmem:[#allocation13 + $0xe0] sm:$0xf] }
 0x19c   :  { %v798_v14 = vmul.f32 %v782_v13, %v739_v17  ;;  %v799_v31 = vmul.f32 %v783_v0, %v758_v63  ;;  %v780_v26 = vunpack.c.l.bf16 %v4430_v6  ;;  %v2713_v13 = vor.u32 %v3330_v7, %v2710_v20  ;;  %v3068_v0 = vld [vmem:[#allocation13 + $0x150] sm:$0xf]  ;;  %v3407_v58 = vld [vmem:[#allocation13 + $0xe4] sm:$0xf0]  ;;  %v3060_v5 = vld [vmem:[#allocation13 + $0x140] sm:$0xf] }
 0x19d   :  { %v824_v34 = vmax.f32 %v4437_v11, 0.0  ;;  %v825_v60 = vmax.f32 %v4440_v12, 0.0  ;;  %1278 = vmatmul.bf16.vlgmr.msrb.gmra.mxu2 %v4444_v23  ;;  %1297 = vmatmul.bf16.vlgmr.msrb.gmra.mxu3 %v4446_v54  ;;  %v3141_v19 = vor.u32 %v3439_v2, %v3140_v59  ;;  %v2957_v16 = vor.u32 %v3393_v27, %v2956_v51  ;;  %v3419_v36 = vld [vmem:[#allocation13 + $0x144] sm:$0xf0]  ;;  %v3124_v6 = vld [vmem:[#allocation13 + $0x1c0] sm:$0xf] }
 0x19e   :  { %v814_v18 = vadd.f32 %v798_v14, %v4372_v48  ;;  %v815_v46 = vadd.f32 %v799_v31, %v552_v49  ;;  %v700_v32 = vpop.f32.mrf.mxu2  ;;  %v719_v43 = vpop.f32.mrf.mxu3  ;;  %v4459_v45 = vpack.c.bf16 %v827_v42, %v826_v47  ;;  %1372 = vmatpush.bf16.msra.mxu3 %v2713_v13  ;;  %1915 = vmatpush.bf16.msrb.mxu0 %v3077_v4  ;;  %v3435_v37 = vld [vmem:[#allocation13 + $0x1c4] sm:$0xf0]  ;;  %v2940_v20 = vld [vmem:[#allocation13 + $0x50] sm:$0xf] }
 0x19f   :  { %v701_v8 = vadd.f32 %v700_v32, %v4278_v15  ;;  %v720_v52 = vadd.f32 %v719_v43, %v4302_v35  ;;  %1934 = vmatpush.bf16.msrb.mxu1 %v3141_v19  ;;  %1876 = vmatpush.bf16.msrb.mxu2 %v2957_v16  ;;  %v3021_v62 = vor.u32 %v3409_v61, %v3020_v39  ;;  %v3387_v32 = vld [vmem:[#allocation13 + $0x44] sm:$0xf0]  ;;  %v2996_v43 = vld [vmem:[#allocation13 + $0xc0] sm:$0xf] }
 0x1a0   :  { %v830_v48 = vmax.f32 %v814_v18, 0.0  ;;  %v831_v29 = vmax.f32 %v815_v46, 0.0  ;;  %v3069_v53 = vor.u32 %v3421_v40, %v3068_v0  ;;  %v495_v47 = vadd.f32 %v4288_v25, %v4260_v57  ;;  %v3116_v0 = vld [vmem:[#allocation13 + $0x1b0] sm:$0xf]  ;;  %v3433_v18 = vld [vmem:[#allocation13 + $0x1b4] sm:$0xf0] }
 0x1a1   :  { %v514_v15 = vadd.f32 %v4290_v28, %v4266_v1  ;;  %v796_v35 = vmul.f32 %v780_v26, %v701_v8  ;;  %v797_v42 = vmul.f32 %v781_v21, %v720_v52  ;;  %v3133_v49 = vor.u32 %v3437_v10, %v3132_v44  ;;  %v3004_v1 = vld [vmem:[#allocation13 + $0xd0] sm:$0xf]  ;;  %v3405_v28 = vld [vmem:[#allocation13 + $0xd4] sm:$0xf0]  ;;  %v2932_v46 = vld [vmem:[#allocation13 + $0x40] sm:$0xf] }
 0x1a2   :  { %v4467_v7 = vpack.c.bf16 %v831_v29, %v830_v48  ;;  %1895 = vmatpush.bf16.msrb.mxu3 %v3021_v62  ;;  %v2949_v17 = vor.u32 %v3391_v24, %v2948_v41  ;;  %v3013_v63 = vor.u32 %v3407_v58, %v3012_v56  ;;  %v928_v57 = vunpack.c.l.b16 %v4459_v45  ;;  %1916 = vmatpush.bf16.msrb.mxu0 %v3069_v53  ;;  %v3403_v10 = vld [vmem:[#allocation13 + $0xc4] sm:$0xf0]  ;;  %v3044_v8 = vld [vmem:[#allocation13 + $0x120] sm:$0xf] }
 0x1a3   :  { %v812_v9 = vadd.f32 %v796_v35, %v495_v47  ;;  %v813_v11 = vadd.f32 %v797_v42, %v514_v15  ;;  %v3061_v25 = vor.u32 %v3419_v36, %v3060_v5  ;;  %v4470_v12 = vpack.c.bf16 %v825_v60, %v824_v34  ;;  %1935 = vmatpush.bf16.msrb.mxu1 %v3133_v49  ;;  %v3052_v34 = vld [vmem:[#allocation13 + $0x130] sm:$0xf]  ;;  %v3417_v60 = vld [vmem:[#allocation13 + $0x134] sm:$0xf0]  ;;  %v3415_v52 = vld [vmem:[#allocation13 + $0x124] sm:$0xf0] }
 0x1a4   :  { %v932_v59 = vunpack.c.l.b16 %v4467_v7  ;;  %v929_v2 = vunpack.c.h.b16 %v4459_v45  ;;  %v933_v14 = vunpack.c.h.b16 %v4467_v7  ;;  %1877 = vmatpush.bf16.msrb.mxu2 %v2949_v17  ;;  %v3125_v21 = vor.u32 %v3435_v37, %v3124_v6  ;;  %v3108_v53 = vld [vmem:[#allocation13 + $0x1a0] sm:$0xf]  ;;  %v3431_v58 = vld [vmem:[#allocation13 + $0x1a4] sm:$0xf0]  ;;  %v2924_v5 = vld [vmem:[#allocation13 + $0x30] sm:$0xf] }
 0x1a5   :  { %v828_v31 = vmax.f32 %v812_v9, 0.0  ;;  %v829_v26 = vmax.f32 %v813_v11, 0.0  ;;  %v2941_v51 = vor.u32 %v3389_v55, %v2940_v20  ;;  %v3005_v13 = vor.u32 %v3405_v28, %v3004_v1  ;;  %v3385_v47 = vld [vmem:[#allocation13 + $0x34] sm:$0xf0]  ;;  %v2988_v15 = vld [vmem:[#allocation13 + $0xb0] sm:$0xf] }
 0x1a6   :  { %v4475_v27 = vpack.c.b16 %v932_v59, %v928_v57  ;;  %v4477_v39 = vpack.c.b16 %v933_v14, %v929_v2  ;;  %1896 = vmatpush.bf16.msrb.mxu3 %v3013_v63  ;;  %1917 = vmatpush.bf16.msrb.mxu0 %v3061_v25  ;;  %v3053_v61 = vor.u32 %v3417_v60, %v3052_v34  ;;  %v926_v19 = vunpack.c.l.b16 %v4470_v12  ;;  %v3401_v35 = vld [vmem:[#allocation13 + $0xb4] sm:$0xf0]  ;;  %v3036_v42 = vld [vmem:[#allocation13 + $0x110] sm:$0xf]  ;;  %v2916_v55 = vld [vmem:[#allocation13 + $0x20] sm:$0xf] }
 0x1a7   :  { %v4479_v4 = vpack.c.bf16 %v829_v26, %v828_v31  ;;  %v927_v40 = vunpack.c.h.b16 %v4470_v12  ;;  %1936 = vmatpush.bf16.msrb.mxu1 %v3125_v21  ;;  %v3117_v41 = vor.u32 %v3433_v18, %v3116_v0  ;;  %v2933_v24 = vor.u32 %v3387_v32, %v2932_v46  ;;  %v3413_v36 = vld [vmem:[#allocation13 + $0x114] sm:$0xf0]  ;;  %v3100_v17 = vld [vmem:[#allocation13 + $0x190] sm:$0xf]  ;;  %v3383_v9 = vld [vmem:[#allocation13 + $0x24] sm:$0xf0] }
 0x1a8   :  { %1321 = vmatmul.bf16.gmra.mxu0 %v4475_v27  ;;  %1340 = vmatmul.bf16.gmra.mxu1 %v4477_v39  ;;  %v2997_v29 = vor.u32 %v3403_v10, %v2996_v43  ;;  %v3045_v62 = vor.u32 %v3415_v52, %v3044_v8  ;;  %v3109_v6 = vor.u32 %v3431_v58, %v3108_v53  ;;  %v3429_v63 = vld [vmem:[#allocation13 + $0x194] sm:$0xf0]  ;;  %v2980_v11 = vld [vmem:[#allocation13 + $0xa0] sm:$0xf]  ;;  %v3399_v57 = vld [vmem:[#allocation13 + $0xa4] sm:$0xf0] }
 0x1a9   :  { %v930_v16 = vunpack.c.l.b16 %v4479_v4  ;;  %v931_v44 = vunpack.c.h.b16 %v4479_v4  ;;  %1878 = vmatpush.bf16.msrb.mxu2 %v2941_v51  ;;  %v2925_v49 = vor.u32 %v3385_v47, %v2924_v5  ;;  %v2989_v37 = vor.u32 %v3401_v35, %v2988_v15  ;;  %v3028_v25 = vld [vmem:[#allocation13 + $0x100] sm:$0xf]  ;;  %v3411_v1 = vld [vmem:[#allocation13 + $0x104] sm:$0xf0]  ;;  %v2908_v21 = vld [vmem:[#allocation13 + $0x10] sm:$0xf] }
 0x1aa   :  { %1897 = vmatpush.bf16.msrb.mxu3 %v3005_v13  ;;  %1918 = vmatpush.bf16.msrb.mxu0 %v3053_v61  ;;  %v3037_v20 = vor.u32 %v3413_v36, %v3036_v42  ;;  %v3101_v28 = vor.u32 %v3429_v63, %v3100_v17  ;;  %v2917_v59 = vor.u32 %v3383_v9, %v2916_v55  ;;  %v3092_v2 = vld [vmem:[#allocation13 + $0x180] sm:$0xf]  ;;  %v3427_v26 = vld [vmem:[#allocation13 + $0x184] sm:$0xf0]  ;;  %v3381_v51 = vld [vmem:[#allocation13 + $0x14] sm:$0xf0] }
 0x1ab   :  { %v4487_v56 = vpack.c.b16 %v930_v16, %v926_v19  ;;  %v4489_v48 = vpack.c.b16 %v931_v44, %v927_v40  ;;  %1937 = vmatpush.bf16.msrb.mxu1 %v3117_v41  ;;  %v2981_v14 = vor.u32 %v3399_v57, %v2980_v11  ;;  %v3029_v31 = vor.u32 %v3411_v1, %v3028_v25  ;;  %v2972_v13 = vld [vmem:[#allocation13 + $0x90] sm:$0xf]  ;;  %v3397_v34 = vld [vmem:[#allocation13 + $0x94] sm:$0xf0]  ;;  %v3424_v18 = vld [vmem:[#allocation13 + $0x174] sm:$0xf] }
 0x1ac   :  { %v3093_v60 = vor.u32 %v3427_v26, %v3092_v2  ;;  %v2909_v61 = vor.u32 %v3381_v51, %v2908_v21  ;;  %v2973_v0 = vor.u32 %v3397_v34, %v2972_v13  ;;  %v3086_v46 = vld [vmem:[#allocation13 + $0x178] sm:$0xf0]  ;;  %v3440_v32 = vld [vmem:[#allocation13 + $0x1f4] sm:$0xf]  ;;  %v2900_v16 = vld [vmem:[#allocation13] sm:$0xf] }
 0x1ad   :  { %1283 = vmatmul.bf16.gmra.mxu2 %v4487_v56  ;;  %1302 = vmatmul.bf16.gmra.mxu3 %v4489_v48  ;;  %v3089_v43 = vor.u32 %v3424_v18, %v3086_v46  ;;  %v3150_v19 = vld [vmem:[#allocation13 + $0x1f8] sm:$0xf0]  ;;  %v3379_v40 = vld [vmem:[#allocation13 + $0x4] sm:$0xf0]  ;;  %v2964_v8 = vld [vmem:[#allocation13 + $0x80] sm:$0xf] }
 0x1ae   :  { %1879 = vmatpush.bf16.msrb.mxu2 %v2933_v24  ;;  %1898 = vmatpush.bf16.msrb.mxu3 %v2997_v29  ;;  %v3153_v44 = vor.u32 %v3440_v32, %v3150_v19  ;;  %v2901_v10 = vor.u32 %v3379_v40, %v2900_v16  ;;  %v3395_v52 = vld [vmem:[#allocation13 + $0x84] sm:$0xf0]  ;;  %v3422_v41 = vld [vmem:[#allocation13 + $0x164] sm:$0xf]  ;;  %v3392_v58 = vld [vmem:[#allocation13 + $0x74] sm:$0xf] }
 0x1af   :  { %1919 = vmatpush.bf16.msrb.mxu0 %v3045_v62  ;;  %1938 = vmatpush.bf16.msrb.mxu1 %v3109_v6  ;;  %v2965_v24 = vor.u32 %v3395_v52, %v2964_v8  ;;  %v3438_v29 = vld [vmem:[#allocation13 + $0x1e4] sm:$0xf]  ;;  %v2958_v5 = vld [vmem:[#allocation13 + $0x78] sm:$0xf0]  ;;  %v3408_v47 = vld [vmem:[#allocation13 + $0xf4] sm:$0xf] }
 0x1b0   :  { %v2961_v15 = vor.u32 %v3392_v58, %v2958_v5  ;;  %v3022_v35 = vld [vmem:[#allocation13 + $0xf8] sm:$0xf0]  ;;  %v3420_v42 = vld [vmem:[#allocation13 + $0x154] sm:$0xf]  ;;  %v3014_v55 = vld [vmem:[#allocation13 + $0xe8] sm:$0xf0] }
 0x1b1   :  { %v3070_v36 = vld [vmem:[#allocation13 + $0x158] sm:$0xf0]  ;;  %v3025_v6 = vor.u32 %v3408_v47, %v3022_v35  ;;  %v3436_v17 = vld [vmem:[#allocation13 + $0x1d4] sm:$0xf]  ;;  %v3418_v57 = vld [vmem:[#allocation13 + $0x144] sm:$0xf] }
 0x1b2   :  { %1880 = vmatpush.bf16.msrb.mxu2 %v2925_v49  ;;  %1899 = vmatpush.bf16.msrb.mxu3 %v2989_v37  ;;  %v3073_v49 = vor.u32 %v3420_v42, %v3070_v36  ;;  %v3134_v63 = vld [vmem:[#allocation13 + $0x1d8] sm:$0xf0]  ;;  %v3390_v37 = vld [vmem:[#allocation13 + $0x64] sm:$0xf]  ;;  %v3062_v25 = vld [vmem:[#allocation13 + $0x148] sm:$0xf0] }
 0x1b3   :  { %1920 = vmatpush.bf16.msrb.mxu0 %v3037_v20  ;;  %1939 = vmatpush.bf16.msrb.mxu1 %v3101_v28  ;;  %v2950_v20 = vld [vmem:[#allocation13 + $0x68] sm:$0xf0]  ;;  %v3434_v1 = vld [vmem:[#allocation13 + $0x1c4] sm:$0xf]  ;;  %v2942_v2 = vld [vmem:[#allocation13 + $0x58] sm:$0xf0] }
 0x1b4   :  { %v2953_v9 = vor.u32 %v3390_v37, %v2950_v20  ;;  %v3126_v28 = vld [vmem:[#allocation13 + $0x1c8] sm:$0xf0]  ;;  %v3006_v26 = vld [vmem:[#allocation13 + $0xd8] sm:$0xf0]  ;;  %v3432_v18 = vld [vmem:[#allocation13 + $0x1b4] sm:$0xf]  ;;  %v1433_v20 = vunpack.c.h.bf16 %v4364_v38 }
 0x1b5   :  { %v3129_v21 = vor.u32 %v3434_v1, %v3126_v28  ;;  %v1425_v34 = vld [vmem:[#allocation15 + $0x18] sm:$0xff]  ;;  %v2934_v19 = vld [vmem:[#allocation13 + $0x48] sm:$0xf0]  ;;  %v3414_v8 = vld [vmem:[#allocation13 + $0x124] sm:$0xf] }
 0x1b6   :  { %1881 = vmatpush.bf16.msrb.mxu2 %v2917_v59  ;;  %1900 = vmatpush.bf16.msrb.mxu3 %v2981_v14  ;;  %v3388_v59 = vld [vmem:[#allocation13 + $0x54] sm:$0xf]  ;;  %v3065_v14 = vor.u32 %v3418_v57, %v3062_v25  ;;  %v3118_v32 = vld [vmem:[#allocation13 + $0x1b8] sm:$0xf0]  ;;  %v3430_v52 = vld [vmem:[#allocation13 + $0x1a4] sm:$0xf]  ;;  %v1453_v58 = vunpack.c.h.bf16 %v1425_v34 }
 0x1b7   :  { %1921 = vmatpush.bf16.msrb.mxu0 %v3029_v31  ;;  %1940 = vmatpush.bf16.msrb.mxu1 %v3093_v60  ;;  %v3404_v31 = vld [vmem:[#allocation13 + $0xd4] sm:$0xf]  ;;  %v2945_v51 = vor.u32 %v3388_v59, %v2942_v2  ;;  %v4499_v60 = vld [vmem:[#allocation15 + $0x8] sm:$0xff]  ;;  %v3121_v16 = vor.u32 %v3432_v18, %v3118_v32  ;;  %v3102_v37 = vld [vmem:[#allocation13 + $0x198] sm:$0xf0]  ;;  %v1434_v2 = vunpack.c.l.bf16 %v4415_v22 }
 0x1b8   :  { %1392 = vmatmul.bf16.vlgmr.msra.gmra.mxu0 %v4411_v50  ;;  %1411 = vmatmul.bf16.vlgmr.msra.gmra.mxu1 %v4413_v33  ;;  %v3078_v50 = vld [vmem:[#allocation13 + $0x168] sm:$0xf0]  ;;  %v3009_v13 = vor.u32 %v3404_v31, %v3006_v26  ;;  %v1424_v5 = vld [vmem:[#allocation15 + $0x10] sm:$0xff]  ;;  %v3410_v1 = vld [vmem:[#allocation13 + $0x104] sm:$0xf] }
 0x1b9   :  { %v3142_v33 = vld [vmem:[#allocation13 + $0x1e8] sm:$0xf0]  ;;  %v3081_v62 = vor.u32 %v3422_v41, %v3078_v50  ;;  %v1452_v50 = vunpack.c.l.bf16 %v1425_v34  ;;  %v3384_v47 = vld [vmem:[#allocation13 + $0x34] sm:$0xf]  ;;  %v1422_v59 = vld [vmem:[#allocation15] sm:$0xff] }
 0x1ba   :  { %1882 = vmatpush.bf16.msrb.mxu2 %v2909_v61  ;;  %1901 = vmatpush.bf16.msrb.mxu3 %v2973_v0  ;;  %v3145_v53 = vor.u32 %v3438_v29, %v3142_v33  ;;  %v3416_v61 = vld [vmem:[#allocation13 + $0x134] sm:$0xf]  ;;  %v3054_v0 = vld [vmem:[#allocation13 + $0x138] sm:$0xf0]  ;;  %v3110_v41 = vld [vmem:[#allocation13 + $0x1a8] sm:$0xf0]  ;;  %v1432_v33 = vunpack.c.l.bf16 %v4364_v38  ;;  %v1435_v38 = vunpack.c.h.bf16 %v4415_v22 }
 0x1bb   :  { %1990 = vmatpush.bf16.msra.mxu0 %v3089_v43  ;;  %2009 = vmatpush.bf16.msra.mxu1 %v3153_v44  ;;  %v3057_v46 = vor.u32 %v3416_v61, %v3054_v0  ;;  %v3386_v43 = vld [vmem:[#allocation13 + $0x44] sm:$0xf]  ;;  %v3400_v35 = vld [vmem:[#allocation13 + $0xb4] sm:$0xf]  ;;  %v3113_v42 = vor.u32 %v3430_v52, %v3110_v41  ;;  %v3030_v28 = vld [vmem:[#allocation13 + $0x108] sm:$0xf0] }
 0x1bc   :  { %v2937_v40 = vor.u32 %v3386_v43, %v2934_v19  ;;  %v3402_v44 = vld [vmem:[#allocation13 + $0xc4] sm:$0xf]  ;;  %v3033_v34 = vor.u32 %v3410_v1, %v3030_v28  ;;  %v3380_v61 = vld [vmem:[#allocation13 + $0x14] sm:$0xf]  ;;  %v2910_v0 = vld [vmem:[#allocation13 + $0x18] sm:$0xf0]  ;;  %v1430_v19 = vunpack.c.l.bf16 %v4383_v30  ;;  %v1439_v1 = vunpack.c.h.bf16 %v4470_v12 }
 0x1bd   :  { %1354 = vmatmul.bf16.vlgmr.msra.gmra.mxu2 %v4444_v23  ;;  %1373 = vmatmul.bf16.vlgmr.msra.gmra.mxu3 %v4446_v54  ;;  %v3137_v23 = vor.u32 %v3436_v17, %v3134_v63  ;;  %v3406_v54 = vld [vmem:[#allocation13 + $0xe4] sm:$0xf]  ;;  %v3428_v63 = vld [vmem:[#allocation13 + $0x194] sm:$0xf]  ;;  %v2974_v43 = vld [vmem:[#allocation13 + $0x98] sm:$0xf0] }
 0x1be   :  { %1883 = vmatpush.bf16.msrb.mxu2 %v2901_v10  ;;  %1902 = vmatpush.bf16.msrb.mxu3 %v2965_v24  ;;  %v3017_v11 = vor.u32 %v3406_v54, %v3014_v55  ;;  %v2998_v10 = vld [vmem:[#allocation13 + $0xc8] sm:$0xf0]  ;;  %v1436_v24 = vunpack.c.l.bf16 %v4393_v3  ;;  %v1449_v54 = vunpack.c.h.bf16 %v4499_v60  ;;  %v3105_v31 = vor.u32 %v3428_v63, %v3102_v37  ;;  %v3396_v32 = vld [vmem:[#allocation13 + $0x94] sm:$0xf]  ;;  %v3378_v41 = vld [vmem:[#allocation13 + $0x4] sm:$0xf] }
 0x1bf   :  { %1991 = vmatpush.bf16.msra.mxu0 %v3081_v62  ;;  %2010 = vmatpush.bf16.msra.mxu1 %v3145_v53  ;;  %v1448_v62 = vunpack.c.l.bf16 %v4499_v60  ;;  %v1437_v53 = vunpack.c.h.bf16 %v4393_v3  ;;  %v2918_v55 = vld [vmem:[#allocation13 + $0x28] sm:$0xf0]  ;;  %v2977_v52 = vor.u32 %v3396_v32, %v2974_v43  ;;  %v1428_v63 = vld [vmem:[#allocation15 + $0x30] sm:$0xff] }
 0x1c0   :  { %v1468_v3 = vmul.f32 %v1452_v50, %v1436_v24  ;;  %v3094_v60 = vld [vmem:[#allocation13 + $0x188] sm:$0xf0]  ;;  %v3394_v50 = vld [vmem:[#allocation13 + $0x84] sm:$0xf] }
 0x1c1   :  { %v1464_v57 = vmul.f32 %v1448_v62, %v1432_v33  ;;  %v1469_v25 = vmul.f32 %v1453_v58, %v1437_v53  ;;  %v2902_v24 = vld [vmem:[#allocation13 + $0x8] sm:$0xf0] }
 0x1c2   :  { %1952 = vmatpush.bf16.msra.mxu2 %v2961_v15  ;;  %1971 = vmatpush.bf16.msra.mxu3 %v3025_v6  ;;  %v2926_v15 = vld [vmem:[#allocation13 + $0x38] sm:$0xf0]  ;;  %v2966_v33 = vld [vmem:[#allocation13 + $0x88] sm:$0xf0]  ;;  %v2905_v62 = vor.u32 %v3378_v41, %v2902_v24 }
 0x1c3   :  { %1992 = vmatpush.bf16.msra.mxu0 %v3073_v49  ;;  %2011 = vmatpush.bf16.msra.mxu1 %v3137_v23  ;;  %v2929_v36 = vor.u32 %v3384_v47, %v2926_v15  ;;  %v2990_v6 = vld [vmem:[#allocation13 + $0xb8] sm:$0xf0]  ;;  %v3412_v49 = vld [vmem:[#allocation13 + $0x114] sm:$0xf]  ;;  %v3382_v23 = vld [vmem:[#allocation13 + $0x24] sm:$0xf]  ;;  %v4511_v18 = vpack.c.bf16 %v1468_v3, %v1464_v57  ;;  %v2969_v47 = vor.u32 %v3394_v50, %v2966_v33  ;;  %v1438_v57 = vunpack.c.l.bf16 %v4470_v12 }
 0x1c4   :  { %v2921_v26 = vor.u32 %v3382_v23, %v2918_v55  ;;  %v1427_v15 = vld [vmem:[#allocation15 + $0x28] sm:$0xff]  ;;  %v1426_v3 = vld [vmem:[#allocation15 + $0x20] sm:$0xff]  ;;  %v1443_v55 = vunpack.c.h.bf16 %v4479_v4 }
 0x1c5   :  { %v1455_v28 = vunpack.c.h.bf16 %v1426_v3 }
 0x1c6   :  { %1953 = vmatpush.bf16.msra.mxu2 %v2953_v9  ;;  %1972 = vmatpush.bf16.msra.mxu3 %v3017_v11  ;;  %v3398_v9 = vld [vmem:[#allocation13 + $0xa4] sm:$0xf]  ;;  %v2982_v11 = vld [vmem:[#allocation13 + $0xa8] sm:$0xf0] }
 0x1c7   :  { %1993 = vmatpush.bf16.msra.mxu0 %v3065_v14  ;;  %2012 = vmatpush.bf16.msra.mxu1 %v3129_v21  ;;  %v1450_v14 = vunpack.c.l.bf16 %v1424_v5  ;;  %v3426_v21 = vld [vmem:[#allocation13 + $0x184] sm:$0xf] }
 0x1c8   :  { %1397 = vmatmul.bf16.gmra.mxu0 %v4475_v27  ;;  %1416 = vmatmul.bf16.gmra.mxu1 %v4477_v39  ;;  %v3001_v27 = vor.u32 %v3402_v44, %v2998_v10  ;;  %v3046_v39 = vld [vmem:[#allocation13 + $0x128] sm:$0xf0]  ;;  %v1447_v44 = vunpack.c.h.bf16 %v1422_v59  ;;  %v3097_v10 = vor.u32 %v3426_v21, %v3094_v60 }
 0x1c9   :  { %v3049_v29 = vor.u32 %v3414_v8, %v3046_v39  ;;  %v2913_v8 = vor.u32 %v3380_v61, %v2910_v0 }
 0x1ca   :  { %1954 = vmatpush.bf16.msra.mxu2 %v2945_v51  ;;  %1973 = vmatpush.bf16.msra.mxu3 %v3009_v13  ;;  %v1451_v51 = vunpack.c.h.bf16 %v1424_v5  ;;  %v2985_v13 = vor.u32 %v3398_v9, %v2982_v11  ;;  %v1429_v5 = vld [vmem:[#allocation15 + $0x38] sm:$0xff]  ;;  %v1459_v9 = vunpack.c.h.bf16 %v1428_v63 }
 0x1cb   :  { %1994 = vmatpush.bf16.msra.mxu0 %v3057_v46  ;;  %2013 = vmatpush.bf16.msra.mxu1 %v3121_v16  ;;  %v1465_v46 = vmul.f32 %v1449_v54, %v1433_v20  ;;  %v1446_v16 = vunpack.c.l.bf16 %v1422_v59  ;;  %v1442_v20 = vunpack.c.l.bf16 %v4479_v4  ;;  %v1458_v54 = vunpack.c.l.bf16 %v1428_v63 }
 0x1cc   :  { %v1467_v39 = vmul.f32 %v1451_v51, %v1435_v38  ;;  %v904_v51 = vld [vmem:[%s4763_s14] sm:$0x3] }
 0x1cd   :  { %1359 = vmatmul.bf16.gmra.mxu2 %v4487_v56  ;;  %1378 = vmatmul.bf16.gmra.mxu3 %v4489_v48  ;;  %v3038_v56 = vld [vmem:[#allocation13 + $0x118] sm:$0xf0]  ;;  %v2993_v48 = vor.u32 %v3400_v35, %v2990_v6  ;;  %v4515_v22 = vpack.c.bf16 %v1469_v25, %v1465_v46  ;;  %v1444_v35 = vunpack.c.l.bf16 %v4467_v7  ;;  %v1461_v6 = vunpack.c.h.bf16 %v1429_v5 }
 0x1ce   :  { %1955 = vmatpush.bf16.msra.mxu2 %v2937_v40  ;;  %1974 = vmatpush.bf16.msra.mxu3 %v3001_v27  ;;  %v3041_v17 = vor.u32 %v3412_v49, %v3038_v56  ;;  %v1431_v40 = vunpack.c.h.bf16 %v4383_v30  ;;  %v1466_v27 = vmul.f32 %v1450_v14, %v1434_v2  ;;  %v1462_v30 = vmul.f32 %v1446_v16, %v1430_v19 }
 0x1cf   :  { %1995 = vmatpush.bf16.msra.mxu0 %v3049_v29  ;;  %2014 = vmatpush.bf16.msra.mxu1 %v3113_v42  ;;  %v1460_v42 = vunpack.c.l.bf16 %v1429_v5  ;;  %v1440_v49 = vunpack.c.l.bf16 %v4459_v45  ;;  %v1456_v56 = vunpack.c.l.bf16 %v1427_v15  ;;  %v1454_v25 = vunpack.c.l.bf16 %v1426_v3 }
 0x1d0   :  { %v1463_v29 = vmul.f32 %v1447_v44, %v1431_v40  ;;  %v1478_v53 = vpack.c.bf16 %v1466_v27, %v1462_v30  ;;  %v1474_v2 = vmul.f32 %v1458_v54, %v1442_v20  ;;  %v1475_v14 = vmul.f32 %v1459_v9, %v1443_v55 }
 0x1d1   :  { %v1476_v37 = vmul.f32 %v1460_v42, %v1444_v35  ;;  %v906_v60 = vperm.slane %v904_v51, 0 }
 0x1d2   :  { %1956 = vmatpush.bf16.msra.mxu2 %v2929_v36  ;;  %1975 = vmatpush.bf16.msra.mxu3 %v2993_v48  ;;  %v1479_v58 = vpack.c.bf16 %v1467_v39, %v1463_v29  ;;  %v1445_v36 = vunpack.c.h.bf16 %v4467_v7  ;;  %v1441_v48 = vunpack.c.h.bf16 %v4459_v45  ;;  %v1472_v7 = vmul.f32 %v1456_v56, %v1440_v49 }
 0x1d3   :  { %1996 = vmatpush.bf16.msra.mxu0 %v3041_v17  ;;  %2015 = vmatpush.bf16.msra.mxu1 %v3105_v31  ;;  %v1457_v17 = vunpack.c.h.bf16 %v1427_v15  ;;  %v1470_v31 = vmul.f32 %v1454_v25, %v1438_v57 }
 0x1d4   :  { %v1477_v23 = vmul.f32 %v1461_v6, %v1445_v36  ;;  %v1484_v45 = vpack.c.bf16 %v1476_v37, %v1472_v7  ;;  %v907_v6 = vperm.slane %v904_v51, 1 }
 0x1d5   :  { %v1473_v11 = vmul.f32 %v1457_v17, %v1441_v48  ;;  %v1482_v21 = vpack.c.bf16 %v1474_v2, %v1470_v31 }
 0x1d6   :  { %1957 = vmatpush.bf16.msra.mxu2 %v2921_v26  ;;  %1976 = vmatpush.bf16.msra.mxu3 %v2985_v13  ;;  %v1471_v26 = vmul.f32 %v1455_v28, %v1439_v1 }
 0x1d7   :  { %1997 = vmatpush.bf16.msra.mxu0 %v3033_v34  ;;  %2016 = vmatpush.bf16.msra.mxu1 %v3097_v10  ;;  %v1485_v59 = vpack.c.bf16 %v1477_v23, %v1473_v11 }
 0x1d8   :  { %1922 = vmatmul.bf16.vlgmr.msrb.gmra.mxu0 %v4511_v18  ;;  %1941 = vmatmul.bf16.vlgmr.msrb.gmra.mxu1 %v4515_v22  ;;  %v1483_v38 = vpack.c.bf16 %v1475_v14, %v1471_v26 }
 0x1da   :  { %1958 = vmatpush.bf16.msra.mxu2 %v2913_v8  ;;  %1977 = vmatpush.bf16.msra.mxu3 %v2977_v52 }
 0x1dd   :  { %1884 = vmatmul.bf16.vlgmr.msrb.gmra.mxu2 %v1478_v53  ;;  %1903 = vmatmul.bf16.vlgmr.msrb.gmra.mxu3 %v1479_v58 }
 0x1de   :  { %1959 = vmatpush.bf16.msra.mxu2 %v2905_v62  ;;  %1978 = vmatpush.bf16.msra.mxu3 %v2969_v47 }
 0x1e8   :  { %1927 = vmatmul.bf16.gmra.mxu0 %v1484_v45  ;;  %1946 = vmatmul.bf16.gmra.mxu1 %v1485_v59 }
 0x1ed   :  { %1889 = vmatmul.bf16.gmra.mxu2 %v1482_v21  ;;  %1908 = vmatmul.bf16.gmra.mxu3 %v1483_v38 }
 0x1f8   :  { %1998 = vmatmul.bf16.vlgmr.msra.gmra.mxu0 %v4511_v18  ;;  %2017 = vmatmul.bf16.vlgmr.msra.gmra.mxu1 %v4515_v22 }
 0x1fd   :  { %1960 = vmatmul.bf16.vlgmr.msra.gmra.mxu2 %v1478_v53  ;;  %1979 = vmatmul.bf16.vlgmr.msra.gmra.mxu3 %v1479_v58 }
 0x208   :  { %2003 = vmatmul.bf16.gmra.mxu0 %v1484_v45  ;;  %2022 = vmatmul.bf16.gmra.mxu1 %v1485_v59 }
 0x20d   :  { %1965 = vmatmul.bf16.gmra.mxu2 %v1482_v21  ;;  %1984 = vmatmul.bf16.gmra.mxu3 %v1483_v38 }
 0x215   :  { %v1317_v12 = vpop.f32.mrf.mxu0  ;;  %v1336_v4 = vpop.f32.mrf.mxu1 }
 0x21d   :  { %v1319_v13 = vpop.f32.mrf.mxu0  ;;  %v1338_v34 = vpop.f32.mrf.mxu1 }
 0x220   :  { %v1279_v61 = vpop.f32.mrf.mxu2  ;;  %v1298_v0 = vpop.f32.mrf.mxu3 }
 0x221   :  { %v1280_v18 = vadd.f32 %v1279_v61, %v906_v60 }
 0x223   :  { %v1299_v46 = vadd.f32 %v1298_v0, %v1280_v18 }
 0x225   :  { %v1318_v32 = vadd.f32 %v1317_v12, %v1299_v46  ;;  %v1322_v43 = vpop.f32.mrf.mxu0  ;;  %v1341_v19 = vpop.f32.mrf.mxu1  ;;  %v3449_v46 = vld [vmem:[%s4768_s19 + $0x38] sm:$0xff] }
 0x226   :  { %2220 = vmatpush.bf16.msrb.mxu2 %v3449_v46 }
 0x227   :  { %v4532_v16 = vadd.f32 %v1336_v4, %v1318_v32  ;;  %v3457_v32 = vld [vmem:[%s4768_s19 + $0x78] sm:$0xff] }
 0x228   :  { %v1281_v40 = vpop.f32.mrf.mxu2  ;;  %v1300_v44 = vpop.f32.mrf.mxu3  ;;  %2239 = vmatpush.bf16.msrb.mxu3 %v3457_v32 }
 0x229   :  { %v1282_v22 = vadd.f32 %v1281_v40, %v906_v60 }
 0x22b   :  { %v1301_v10 = vadd.f32 %v1300_v44, %v1282_v22  ;;  %v1550_v22 = vld [vmem:[%s4765_s16] sm:$0x3] }
 0x22d   :  { %v1320_v8 = vadd.f32 %v1319_v13, %v1301_v10  ;;  %v1324_v27 = vpop.f32.mrf.mxu0  ;;  %v1343_v39 = vpop.f32.mrf.mxu1  ;;  %v3465_v10 = vld [vmem:[%s4770_s21 + $0x38] sm:$0xff] }
 0x22e   :  { %2422 = vmatpush.bf16.msrb.mxu0 %v3465_v10 }
 0x22f   :  { %v4534_v52 = vadd.f32 %v1338_v34, %v1320_v8  ;;  %v3473_v8 = vld [vmem:[%s4770_s21 + $0x78] sm:$0xff] }
 0x230   :  { %v1284_v41 = vpop.f32.mrf.mxu2  ;;  %v1303_v24 = vpop.f32.mrf.mxu3  ;;  %2441 = vmatpush.bf16.msrb.mxu1 %v3473_v8 }
 0x231   :  { %v1285_v50 = vadd.f32 %v1284_v41, %v906_v60 }
 0x233   :  { %v1304_v30 = vadd.f32 %v1303_v24, %v1285_v50  ;;  %v3456_v50 = vld [vmem:[%s4768_s19 + $0x70] sm:$0xff] }
 0x234   :  { %2240 = vmatpush.bf16.msrb.mxu3 %v3456_v50  ;;  %v3442_v50 = vld [vmem:[%s4768_s19] sm:$0xff] }
 0x235   :  { %v1323_v29 = vadd.f32 %v1322_v43, %v1304_v30  ;;  %v1393_v33 = vpop.f32.mrf.mxu0  ;;  %v1412_v62 = vpop.f32.mrf.mxu1  ;;  %v3464_v30 = vld [vmem:[%s4770_s21 + $0x30] sm:$0xff] }
 0x236   :  { %2423 = vmatpush.bf16.msrb.mxu0 %v3464_v30 }
 0x237   :  { %v4536_v53 = vadd.f32 %v1341_v19, %v1323_v29  ;;  %v3472_v29 = vld [vmem:[%s4770_s21 + $0x70] sm:$0xff] }
 0x238   :  { %v1286_v58 = vpop.f32.mrf.mxu2  ;;  %v1305_v5 = vpop.f32.mrf.mxu3  ;;  %2442 = vmatpush.bf16.msrb.mxu1 %v3472_v29 }
 0x239   :  { %v1287_v47 = vadd.f32 %v1286_v58, %v906_v60 }
 0x23b   :  { %v1306_v15 = vadd.f32 %v1305_v5, %v1287_v47 }
 0x23d   :  { %v1325_v35 = vadd.f32 %v1324_v27, %v1306_v15  ;;  %v1395_v42 = vpop.f32.mrf.mxu0  ;;  %v1414_v36 = vpop.f32.mrf.mxu1  ;;  %v3448_v27 = vld [vmem:[%s4768_s19 + $0x30] sm:$0xff]  ;;  %v3463_v15 = vld [vmem:[%s4770_s21 + $0x28] sm:$0xff] }
 0x23e   :  { %2221 = vmatpush.bf16.msrb.mxu2 %v3448_v27  ;;  %2424 = vmatpush.bf16.msrb.mxu0 %v3463_v15 }
 0x23f   :  { %v4538_v49 = vadd.f32 %v1343_v39, %v1325_v35  ;;  %v4576_v39 = vperm.slane %v1550_v22, 0  ;;  %v3471_v35 = vld [vmem:[%s4770_s21 + $0x68] sm:$0xff] }
 0x240   :  { %v1355_v56 = vpop.f32.mrf.mxu2  ;;  %v1374_v48 = vpop.f32.mrf.mxu3  ;;  %2443 = vmatpush.bf16.msrb.mxu1 %v3471_v35 }
 0x241   :  { %v1356_v17 = vadd.f32 %v1355_v56, %v907_v6 }
 0x243   :  { %v1375_v63 = vadd.f32 %v1374_v48, %v1356_v17  ;;  %v3454_v48 = vld [vmem:[%s4768_s19 + $0x60] sm:$0xff] }
 0x244   :  { %v3462_v17 = vld [vmem:[%s4770_s21 + $0x20] sm:$0xff] }
 0x245   :  { %v1394_v37 = vadd.f32 %v1393_v33, %v1375_v63  ;;  %v1398_v23 = vpop.f32.mrf.mxu0  ;;  %v1417_v3 = vpop.f32.mrf.mxu1  ;;  %v3447_v33 = vld [vmem:[%s4768_s19 + $0x28] sm:$0xff]  ;;  %v3470_v63 = vld [vmem:[%s4770_s21 + $0x60] sm:$0xff]  ;;  %2425 = vmatpush.bf16.msrb.mxu0 %v3462_v17  ;;  %v2030_v17 = vld [vmem:[%s4767_s18 + $0x10] sm:$0xff] }
 0x246   :  { %2222 = vmatpush.bf16.msrb.mxu2 %v3447_v33  ;;  %2444 = vmatpush.bf16.msrb.mxu1 %v3470_v63  ;;  %v3450_v33 = vld [vmem:[%s4768_s19 + $0x40] sm:$0xff] }
 0x247   :  { %v4540_v20 = vadd.f32 %v1412_v62, %v1394_v37  ;;  %v3455_v62 = vld [vmem:[%s4768_s19 + $0x68] sm:$0xff]  ;;  %v3445_v37 = vld [vmem:[%s4768_s19 + $0x18] sm:$0xff] }
 0x248   :  { %v1357_v54 = vpop.f32.mrf.mxu2  ;;  %v1376_v55 = vpop.f32.mrf.mxu3  ;;  %2241 = vmatpush.bf16.msrb.mxu3 %v3455_v62 }
 0x249   :  { %v1358_v9 = vadd.f32 %v1357_v54, %v907_v6  ;;  %v2028_v54 = vld [vmem:[%s4767_s18] sm:$0xff] }
 0x24b   :  { %v1377_v7 = vadd.f32 %v1376_v55, %v1358_v9 }
 0x24c   :  { %2242 = vmatpush.bf16.msrb.mxu3 %v3454_v48 }
 0x24d   :  { %v1396_v11 = vadd.f32 %v1395_v42, %v1377_v7  ;;  %v1400_v57 = vpop.f32.mrf.mxu0  ;;  %v1419_v25 = vpop.f32.mrf.mxu1  ;;  %v3446_v42 = vld [vmem:[%s4768_s19 + $0x20] sm:$0xff]  ;;  %v4632_v7 = vperm.slane %v1550_v22, 1  ;;  %v2029_v22 = vld [vmem:[%s4767_s18 + $0x8] sm:$0xff] }
 0x24e   :  { %2223 = vmatpush.bf16.msrb.mxu2 %v3446_v42  ;;  %v3458_v42 = vld [vmem:[%s4770_s21] sm:$0xff] }
 0x24f   :  { %v4542_v1 = vadd.f32 %v1414_v36, %v1396_v11 }
 0x250   :  { %v1360_v28 = vpop.f32.mrf.mxu2  ;;  %v1379_v45 = vpop.f32.mrf.mxu3 }
 0x251   :  { %v1361_v59 = vadd.f32 %v1360_v28, %v907_v6  ;;  %v3444_v28 = vld [vmem:[%s4768_s19 + $0x10] sm:$0xff] }
 0x252   :  { %2224 = vmatpush.bf16.msrb.mxu2 %v3445_v37 }
 0x253   :  { %v1380_v2 = vadd.f32 %v1379_v45, %v1361_v59  ;;  %v2032_v59 = vunpack.c.l.bf16 %v2028_v54 }
 0x255   :  { %v1399_v14 = vadd.f32 %v1398_v23, %v1380_v2  ;;  %v1923_v31 = vpop.f32.mrf.mxu0  ;;  %v4546_v21 = vpop.f32.mrf.mxu1  ;;  %v3453_v23 = vld [vmem:[%s4768_s19 + $0x58] sm:$0xff] }
 0x256   :  { %2243 = vmatpush.bf16.msrb.mxu3 %v3453_v23  ;;  %2225 = vmatpush.bf16.msrb.mxu2 %v3444_v28 }
 0x257   :  { %v4544_v26 = vadd.f32 %v1417_v3, %v1399_v14 }
 0x258   :  { %v1362_v38 = vpop.f32.mrf.mxu2  ;;  %v1381_v12 = vpop.f32.mrf.mxu3 }
 0x259   :  { %v1363_v4 = vadd.f32 %v1362_v38, %v907_v6 }
 0x25b   :  { %v1382_v51 = vadd.f32 %v1381_v12, %v1363_v4  ;;  %v3460_v4 = vld [vmem:[%s4770_s21 + $0x10] sm:$0xff] }
 0x25d   :  { %v1401_v13 = vadd.f32 %v1400_v57, %v1382_v51  ;;  %v4550_v60 = vpop.f32.mrf.mxu0  ;;  %v4552_v18 = vpop.f32.mrf.mxu1  ;;  %v3461_v57 = vld [vmem:[%s4770_s21 + $0x18] sm:$0xff] }
 0x25e   :  { %2426 = vmatpush.bf16.msrb.mxu0 %v3461_v57 }
 0x25f   :  { %v4548_v34 = vadd.f32 %v1419_v25, %v1401_v13  ;;  %v3469_v25 = vld [vmem:[%s4770_s21 + $0x58] sm:$0xff]  ;;  %v3443_v13 = vld [vmem:[%s4768_s19 + $0x8] sm:$0xff] }
 0x260   :  { %v1885_v61 = vpop.f32.mrf.mxu2  ;;  %v1904_v0 = vpop.f32.mrf.mxu3  ;;  %2445 = vmatpush.bf16.msrb.mxu1 %v3469_v25  ;;  %2226 = vmatpush.bf16.msrb.mxu2 %v3443_v13 }
 0x261   :  { %v1886_v5 = vadd.f32 %v1885_v61, %v4576_v39  ;;  %v3451_v61 = vld [vmem:[%s4768_s19 + $0x48] sm:$0xff] }
 0x262   :  { %2427 = vmatpush.bf16.msrb.mxu0 %v3460_v4  ;;  %v2259_v4 = vld [vmem:[#allocation16 + $0x8] sm:$0xff] }
 0x263   :  { %v1905_v36 = vadd.f32 %v1904_v0, %v1886_v5  ;;  %v2034_v5 = vunpack.c.l.bf16 %v2029_v22 }
 0x264   :  { %2227 = vmatpush.bf16.msrb.mxu2 %v3442_v50 }
 0x265   :  { %v4560_v40 = vpop.f32.mrf.mxu0  ;;  %v4562_v44 = vpop.f32.mrf.mxu1  ;;  %v1924_v3 = vadd.f32 %v1923_v31, %v1905_v36  ;;  %v3452_v31 = vld [vmem:[%s4768_s19 + $0x50] sm:$0xff] }
 0x266   :  { %2244 = vmatpush.bf16.msrb.mxu3 %v3452_v31 }
 0x267   :  { %v1943_v45 = vadd.f32 %v4546_v21, %v1924_v3  ;;  %v3468_v21 = vld [vmem:[%s4770_s21 + $0x50] sm:$0xff] }
 0x268   :  { %v1887_v43 = vpop.f32.mrf.mxu2  ;;  %v1906_v19 = vpop.f32.mrf.mxu3  ;;  %2446 = vmatpush.bf16.msrb.mxu1 %v3468_v21 }
 0x269   :  { %v1888_v55 = vadd.f32 %v1887_v43, %v4576_v39  ;;  %v2040_v46 = vmul.f32 %v2032_v59, %v1943_v45 }
 0x26a   :  { %2245 = vmatpush.bf16.msrb.mxu3 %v3451_v61 }
 0x26b   :  { %v1907_v38 = vadd.f32 %v1906_v19, %v1888_v55  ;;  %v2033_v19 = vunpack.c.h.bf16 %v2028_v54  ;;  %v2048_v30 = vadd.f32 %v2040_v46, %v4532_v16  ;;  %v3466_v16 = vld [vmem:[%s4770_s21 + $0x40] sm:$0xff] }
 0x26d   :  { %v4595_v58 = vpop.f32.mrf.mxu0  ;;  %v4598_v47 = vpop.f32.mrf.mxu1  ;;  %v1926_v32 = vadd.f32 %v4550_v60, %v1907_v38  ;;  %v3467_v60 = vld [vmem:[%s4770_s21 + $0x48] sm:$0xff]  ;;  %v2056_v23 = vmax.f32 %v2048_v30, 0.0 }
 0x26e   :  { %2447 = vmatpush.bf16.msrb.mxu1 %v3467_v60  ;;  %2246 = vmatpush.bf16.msrb.mxu3 %v3450_v33 }
 0x26f   :  { %v1945_v62 = vadd.f32 %v4552_v18, %v1926_v32 }
 0x270   :  { %v1890_v41 = vpop.f32.mrf.mxu2  ;;  %v4578_v24 = vpop.f32.mrf.mxu3 }
 0x271   :  { %v1891_v51 = vadd.f32 %v1890_v41, %v4576_v39  ;;  %v3459_v41 = vld [vmem:[%s4770_s21 + $0x8] sm:$0xff]  ;;  %v2042_v3 = vmul.f32 %v2034_v5, %v1945_v62 }
 0x272   :  { %2428 = vmatpush.bf16.msrb.mxu0 %v3459_v41  ;;  %2448 = vmatpush.bf16.msrb.mxu1 %v3466_v16 }
 0x273   :  { %v1910_v10 = vadd.f32 %v4578_v24, %v1891_v51  ;;  %v2050_v45 = vadd.f32 %v2042_v3, %v4534_v52 }
 0x275   :  { %v1999_v9 = vpop.f32.mrf.mxu0  ;;  %v2018_v11 = vpop.f32.mrf.mxu1  ;;  %v1929_v36 = vadd.f32 %v4560_v40, %v1910_v10  ;;  %v2058_v13 = vmax.f32 %v2050_v45, 0.0 }
 0x276   :  { %2429 = vmatpush.bf16.msrb.mxu0 %v3458_v42 }
 0x277   :  { %v1948_v40 = vadd.f32 %v4562_v44, %v1929_v36 }
 0x278   :  { %v4609_v6 = vpop.f32.mrf.mxu2  ;;  %v4611_v56 = vpop.f32.mrf.mxu3 }
 0x279   :  { %v1893_v48 = vadd.f32 %v4609_v6, %v4576_v39  ;;  %v2036_v39 = vunpack.c.l.bf16 %v2030_v17 }
 0x27b   :  { %v1912_v6 = vadd.f32 %v4611_v56, %v1893_v48 }
 0x27d   :  { %v2001_v8 = vpop.f32.mrf.mxu0  ;;  %v2020_v18 = vpop.f32.mrf.mxu1  ;;  %v1931_v31 = vadd.f32 %v4595_v58, %v1912_v6 }
 0x27f   :  { %v1950_v32 = vadd.f32 %v4598_v47, %v1931_v31 }
 0x280   :  { %v1961_v2 = vpop.f32.mrf.mxu2  ;;  %v1980_v14 = vpop.f32.mrf.mxu3 }
 0x281   :  { %v1962_v12 = vadd.f32 %v1961_v2, %v4632_v7 }
 0x283   :  { %v1981_v0 = vadd.f32 %v1980_v14, %v1962_v12  ;;  %v2044_v14 = vmul.f32 %v2036_v39, %v1948_v40  ;;  %v2258_v12 = vld [vmem:[#allocation16] sm:$0xff] }
 0x284   :  { %v2271_v10 = vunpack.c.h.bf16 %v2258_v12 }
 0x285   :  { %v2000_v43 = vadd.f32 %v1999_v9, %v1981_v0  ;;  %v2035_v9 = vunpack.c.h.bf16 %v2029_v22  ;;  %v2004_v44 = vpop.f32.mrf.mxu0  ;;  %v2023_v51 = vpop.f32.mrf.mxu1  ;;  %v2037_v0 = vunpack.c.h.bf16 %v2030_v17  ;;  %v2052_v46 = vadd.f32 %v2044_v14, %v4536_v53 }
 0x287   :  { %v2019_v27 = vadd.f32 %v2018_v11, %v2000_v43  ;;  %v2270_v43 = vunpack.c.l.bf16 %v2258_v12  ;;  %v2060_v62 = vmax.f32 %v2052_v46, 0.0 }
 0x288   :  { %v1963_v29 = vpop.f32.mrf.mxu2  ;;  %v1982_v24 = vpop.f32.mrf.mxu3 }
 0x289   :  { %v2041_v15 = vmul.f32 %v2033_v19, %v2019_v27  ;;  %v1964_v35 = vadd.f32 %v1963_v29, %v4632_v7  ;;  %v2272_v19 = vunpack.c.l.bf16 %v2259_v4 }
 0x28b   :  { %v2049_v63 = vadd.f32 %v2041_v15, %v4540_v20  ;;  %v1983_v37 = vadd.f32 %v1982_v24, %v1964_v35  ;;  %v2031_v20 = vld [vmem:[%s4767_s18 + $0x18] sm:$0xff] }
 0x28c   :  { %v2038_v21 = vunpack.c.l.bf16 %v2031_v20 }
 0x28d   :  { %v2057_v54 = vmax.f32 %v2049_v63, 0.0  ;;  %v2002_v55 = vadd.f32 %v2001_v8, %v1983_v37  ;;  %v2273_v8 = vunpack.c.h.bf16 %v2259_v4  ;;  %v2006_v36 = vpop.f32.mrf.mxu0 }
 0x28e   :  { %v2046_v37 = vmul.f32 %v2038_v21, %v1950_v32 }
 0x28f   :  { %v2064_v11 = vpack.c.bf16 %v2057_v54, %v2056_v23  ;;  %v2021_v57 = vadd.f32 %v2020_v18, %v2002_v55  ;;  %v2025_v54 = vpop.f32.mrf.mxu1 }
 0x290   :  { %v1966_v25 = vpop.f32.mrf.mxu2  ;;  %v1985_v28 = vpop.f32.mrf.mxu3 }
 0x291   :  { %v2043_v59 = vmul.f32 %v2035_v9, %v2021_v57  ;;  %v1967_v2 = vadd.f32 %v1966_v25, %v4632_v7  ;;  %v2108_v27 = vunpack.c.l.b16 %v2064_v11  ;;  %v2109_v41 = vunpack.c.h.b16 %v2064_v11  ;;  %v2260_v57 = vld [vmem:[#allocation16 + $0x10] sm:$0xff]  ;;  %v2261_v25 = vld [vmem:[#allocation16 + $0x18] sm:$0xff] }
 0x292   :  { %v2262_v60 = vunpack.c.l.bf16 %v2064_v11  ;;  %v2263_v50 = vunpack.c.h.bf16 %v2064_v11  ;;  %v2275_v14 = vunpack.c.h.bf16 %v2260_v57 }
 0x293   :  { %v2051_v38 = vadd.f32 %v2043_v59, %v4542_v1  ;;  %v1986_v56 = vadd.f32 %v1985_v28, %v1967_v2 }
 0x294   :  { %v2278_v48 = vmul.f32 %v2270_v43, %v2262_v60  ;;  %v2279_v17 = vmul.f32 %v2271_v10, %v2263_v50 }
 0x295   :  { %v2059_v52 = vmax.f32 %v2051_v38, 0.0  ;;  %v2005_v61 = vadd.f32 %v2004_v44, %v1986_v56  ;;  %v2276_v44 = vunpack.c.l.bf16 %v2261_v25  ;;  %v2277_v38 = vunpack.c.h.bf16 %v2261_v25 }
 0x297   :  { %v2065_v22 = vpack.c.bf16 %v2059_v52, %v2058_v13  ;;  %v2024_v58 = vadd.f32 %v2023_v51, %v2005_v61 }
 0x298   :  { %v1968_v1 = vpop.f32.mrf.mxu2  ;;  %v1987_v53 = vpop.f32.mrf.mxu3 }
 0x299   :  { %v2045_v30 = vmul.f32 %v2037_v0, %v2024_v58  ;;  %v1969_v29 = vadd.f32 %v1968_v1, %v4632_v7  ;;  %v2110_v24 = vunpack.c.l.b16 %v2065_v22  ;;  %v2111_v33 = vunpack.c.h.b16 %v2065_v22 }
 0x29a   :  { %v2264_v5 = vunpack.c.l.bf16 %v2065_v22  ;;  %v2265_v47 = vunpack.c.h.bf16 %v2065_v22  ;;  %v2039_v7 = vunpack.c.h.bf16 %v2031_v20  ;;  %v2274_v20 = vunpack.c.l.bf16 %v2260_v57  ;;  %v3499_v22 = vld [vmem:[%s4773_s24] sm:$0xff]  }
 0x29b   :  { %v2053_v15 = vadd.f32 %v2045_v30, %v4544_v26  ;;  %v1988_v35 = vadd.f32 %v1987_v53, %v1969_v29  ;;  %v2116_v42 = vpack.c.b16 %v2110_v24, %v2108_v27  ;;  %v2117_v16 = vpack.c.b16 %v2111_v33, %v2109_v41 }
 0x29c   :  { %v2280_v18 = vmul.f32 %v2272_v19, %v2264_v5  ;;  %v2281_v63 = vmul.f32 %v2273_v8, %v2265_v47  ;;  %v2054_v26 = vadd.f32 %v2046_v37, %v4538_v49  ;;  %v3528_v19 = vld [vmem:[%s4771_s22] ss:$0 sm:$0xff]  ;;  %v3500_v27 = vunpack.c.l.bf16 %v3499_v22 }
 0x29d   :  { %v2061_v23 = vmax.f32 %v2053_v15, 0.0  ;;  %v2007_v3 = vadd.f32 %v2006_v36, %v1988_v35  ;;  %2228 = vmatmul.bf16.vlgmr.msrb.gmra.mxu2 %v2116_v42  ;;  %2247 = vmatmul.bf16.vlgmr.msrb.gmra.mxu3 %v2117_v16  ;;  %v3529_v8 = vld [vmem:[%s4769_s20] ss:$0 sm:$0xff]  ;;  %v3501_v35 = vunpack.c.h.bf16 %v3499_v22 }
 0x29e   :  { %v2286_v55 = vpack.c.bf16 %v2280_v18, %v2278_v48  ;;  %v2287_v9 = vpack.c.bf16 %v2281_v63, %v2279_v17  ;;  %v2062_v28 = vmax.f32 %v2054_v26, 0.0  ;;  %v3530_v47 = vld [vmem:[%s4799_s5] sm:$0xff]  ;;  %v3509_v63 = vld [vmem:[%s4773_s24 + $0x8] sm:$0xff]  }
 0x29f   :  { %v2066_v40 = vpack.c.bf16 %v2061_v23, %v2060_v62  ;;  %v2026_v39 = vadd.f32 %v2025_v54, %v2007_v3  ;;  %v3531_v54 = vld [vmem:[%s4799_s5 + $0x8] sm:$0xff] }
 0x2a0   :  { %2430 = vmatmul.bf16.vlgmr.msrb.gmra.mxu0 %v2286_v55  ;;  %2449 = vmatmul.bf16.vlgmr.msrb.gmra.mxu1 %v2287_v9  ;;  %v3504_v9 = vunpack.c.l.bf16 %v3509_v63 }
 0x2a1   :  { %v2047_v6 = vmul.f32 %v2039_v7, %v2026_v39  ;;  %v2266_v59 = vunpack.c.l.bf16 %v2066_v40  ;;  %v2267_v2 = vunpack.c.h.bf16 %v2066_v40  ;;  %v2112_v56 = vunpack.c.l.b16 %v2066_v40 }
 0x2a2   :  { %v2113_v12 = vunpack.c.h.b16 %v2066_v40 }
 0x2a3   :  { %v2055_v11 = vadd.f32 %v2047_v6, %v4548_v34  ;;  %v2282_v13 = vmul.f32 %v2274_v20, %v2266_v59  ;;  %v2283_v52 = vmul.f32 %v2275_v14, %v2267_v2  ;;  %v3532_v59 = vld [vmem:[%s4799_s5 + $0x10] sm:$0xff]  ;;  %v3505_v14 = vunpack.c.h.bf16 %v3509_v63 }
 0x2a5   :  { %v2063_v45 = vmax.f32 %v2055_v11, 0.0 }
 0x2a7   :  { %v2067_v31 = vpack.c.bf16 %v2063_v45, %v2062_v28 }
 0x2a9   :  { %v2114_v4 = vunpack.c.l.b16 %v2067_v31  ;;  %v2115_v21 = vunpack.c.h.b16 %v2067_v31  ;;  %v2268_v51 = vunpack.c.l.bf16 %v2067_v31  ;;  %v2269_v49 = vunpack.c.h.bf16 %v2067_v31 }
 0x2ab   :  { %v2118_v34 = vpack.c.b16 %v2114_v4, %v2112_v56  ;;  %v2119_v61 = vpack.c.b16 %v2115_v21, %v2113_v12  ;;  %v2284_v0 = vmul.f32 %v2276_v44, %v2268_v51  ;;  %v2285_v46 = vmul.f32 %v2277_v38, %v2269_v49  ;;  %v3533_v51 = vld [vmem:[%s4799_s5 + $0x18] sm:$0xff] }
 0x2ad   :  { %2233 = vmatmul.bf16.gmra.mxu2 %v2118_v34  ;;  %2252 = vmatmul.bf16.gmra.mxu3 %v2119_v61  ;;  %v2288_v32 = vpack.c.bf16 %v2284_v0, %v2282_v13  ;;  %v2289_v43 = vpack.c.bf16 %v2285_v46, %v2283_v52 }
 0x2b0   :  { %2435 = vmatmul.bf16.gmra.mxu0 %v2288_v32  ;;  %2454 = vmatmul.bf16.gmra.mxu1 %v2289_v43 }
 0x31d   :  { %v2431_v58 = vpop.f32.mrf.mxu0  ;;  %v2450_v10 = vpop.f32.mrf.mxu1 }
 0x31e   :  { %v2432_v1 = vadd.f32 %v3528_v19, %v2431_v58 }
 0x320   :  { %v2451_v41 = vadd.f32 %v2450_v10, %v2432_v1  ;;  %v2229_v60 = vpop.f32.mrf.mxu2  ;;  %v2248_v50 = vpop.f32.mrf.mxu3 }
 0x321   :  { %v2230_v30 = vadd.f32 %v3529_v8, %v2229_v60 }
 0x322   :  { %v2468_v29 = vmul.f32 %v3500_v27, %v2451_v41 }
 0x323   :  { %v2249_v24 = vadd.f32 %v2248_v50, %v2230_v30 }
 0x325   :  { %v2472_v33 = vadd.f32 %v2468_v29, %v2249_v24  ;;  %v2433_v62 = vpop.f32.mrf.mxu0  ;;  %v2452_v53 = vpop.f32.mrf.mxu1 }
 0x326   :  { %v2434_v5 = vadd.f32 %v3528_v19, %v2433_v62 }
 0x327   :  { %v2476_v15 = vadd.f32 %v3530_v47, %v2472_v33 }
 0x328   :  { %v2453_v42 = vadd.f32 %v2452_v53, %v2434_v5  ;;  %v2231_v16 = vpop.f32.mrf.mxu2  ;;  %v2250_v36 = vpop.f32.mrf.mxu3 }
 0x329   :  { %2480 = vst.msk [vmem:[%s4774_s25] sm:$0xff] %vm250_vm1, %v2476_v15  ;;  %v2232_v48 = vadd.f32 %v3529_v8, %v2231_v16 }
 0x32a   :  { %v2469_v18 = vmul.f32 %v3501_v35, %v2453_v42 }
 0x32b   :  { %v2251_v17 = vadd.f32 %v2250_v36, %v2232_v48 }
 0x32d   :  { %v2473_v37 = vadd.f32 %v2469_v18, %v2251_v17  ;;  %v2436_v23 = vpop.f32.mrf.mxu0  ;;  %v2455_v3 = vpop.f32.mrf.mxu1 }
 0x32e   :  { %v2437_v7 = vadd.f32 %v3528_v19, %v2436_v23 }
 0x32f   :  { %v2477_v55 = vadd.f32 %v3531_v54, %v2473_v37 }
 0x330   :  { %v2456_v40 = vadd.f32 %v2455_v3, %v2437_v7  ;;  %v2234_v39 = vpop.f32.mrf.mxu2  ;;  %v2253_v26 = vpop.f32.mrf.mxu3 }
 0x331   :  { %2481 = vst.msk [vmem:[%s4774_s25 + $0x8] sm:$0xff] %vm250_vm1, %v2477_v55  ;;  %v2235_v6 = vadd.f32 %v3529_v8, %v2234_v39 }
 0x332   :  { %v2470_v11 = vmul.f32 %v3504_v9, %v2456_v40 }
 0x333   :  { %v2254_v57 = vadd.f32 %v2253_v26, %v2235_v6 }
 0x335   :  { %v2474_v25 = vadd.f32 %v2470_v11, %v2254_v57  ;;  %v2438_v28 = vpop.f32.mrf.mxu0  ;;  %v2457_v2 = vpop.f32.mrf.mxu1 }
 0x336   :  { %v2439_v45 = vadd.f32 %v3528_v19, %v2438_v28 }
 0x337   :  { %v2478_v20 = vadd.f32 %v3532_v59, %v2474_v25 }
 0x338   :  { %v2458_v31 = vadd.f32 %v2457_v2, %v2439_v45  ;;  %v2236_v44 = vpop.f32.mrf.mxu2  ;;  %v2255_v56 = vpop.f32.mrf.mxu3 }
 0x339   :  { %2482 = vst.msk [vmem:[%s4774_s25 + $0x10] sm:$0xff] %vm250_vm1, %v2478_v20  ;;  %v2237_v38 = vadd.f32 %v3529_v8, %v2236_v44 }
 0x33a   :  { %v2471_v12 = vmul.f32 %v3505_v14, %v2458_v31 }
 0x33b   :  { %v2256_v4 = vadd.f32 %v2255_v56, %v2237_v38 }
 0x33d   :  { %v2475_v21 = vadd.f32 %v2471_v12, %v2256_v4 }
 0x33f   :  { %v2479_v49 = vadd.f32 %v3533_v51, %v2475_v21 }
 0x341   :  { %2483 = vst.msk [vmem:[%s4774_s25 + $0x18] sm:$0xff] %vm250_vm1, %v2479_v49 }
 0x342   :  { %2488 = vsyncpa [#allocation3], 1 }
 0x343   :  { %2489 = vsyncpa [#allocation5], 1 }
 0x344   :  { %2490 = vsyncpa [#allocation8], 1 }
 0x345   :  { %2491 = vsyncpa [#allocation11], 1 }
 0x346   :  { %2492 = vsyncpa [#allocation14], 1 }
 0x347   :  { %2493 = vsyncpa [#allocation17], 1 }

</bundles_post_ra>
